<compile_context>
chip_gen: v7x
topology: tpu7x:2x2x1
jax: 0.10.0
libtpu: 0.0.40
codegen_flags: <defaults>
</compile_context>

<pallas_src>
import functools

import jax
import jax.numpy as jnp
from jax.experimental import pallas as pl
from jax.experimental.pallas import tpu as pltpu


# Row indices inside the packed f32 "rows" slab (see make_params).
_ROW_WIH0 = 0   # w_ih_l0^T                    (1, 4H)   layer-0 K=1 input weights
_ROW_B0 = 1     # b_ih_l0 + b_hh_l0            (1, 4H)
_ROW_BL1 = 2    # b_ih_l1 + b_hh_l1            (1, 4H)
_ROW_WP = 3     # prediction_to_latent.weight^T (1, H)
_ROW_BP = 4     # prediction_to_latent.bias     (1, H)
_ROW_B1 = 5     # model[0].bias                (1, 4H)
_ROW_B2 = 6     # model[2].bias (padded)       (1, Lpad)


# ---------------------------------------------------------------------------
# Fused Encoder kernel: 2-layer LSTM (unrolled over time) + head MLP.
# LSTM gate order is i|f|g|o (PyTorch); the two LSTM biases are pre-summed.
# ---------------------------------------------------------------------------
def encoder_kernel(x_ref, y_ref, wslab_ref, w2_ref, rows_ref, out_ref,
                   *, T, B, H, mean, std):
    FourH = 4 * H
    Lpad = out_ref.shape[1]
    inv_std = 1.0 / std
    f32, bf16 = jnp.float32, jnp.bfloat16

    # ---- unpack packed parameter slabs (static slices are free) ----
    rows = rows_ref[...]                                   # (8, Wmax) f32
    wih0 = rows[_ROW_WIH0:_ROW_WIH0 + 1, :FourH]           # (1, 4H)
    b0 = rows[_ROW_B0:_ROW_B0 + 1, :FourH]                 # (1, 4H)
    bl1 = rows[_ROW_BL1:_ROW_BL1 + 1, :FourH]              # (1, 4H)
    wp = rows[_ROW_WP:_ROW_WP + 1, :H]                     # (1, H)
    bp = rows[_ROW_BP:_ROW_BP + 1, :H]                     # (1, H)
    b1 = rows[_ROW_B1:_ROW_B1 + 1, :FourH]                 # (1, 4H)
    b2 = rows[_ROW_B2:_ROW_B2 + 1, :Lpad]                  # (1, Lpad)

    wslab = wslab_ref[...]                                 # (5H, 4H) bf16
    whh0 = wslab[0:H, :]                                   # (H, 4H)  layer-0 recurrent
    wl1 = wslab[H:3 * H, :]                                # (2H, 4H) layer-1 fused [W_ih; W_hh]
    whd = wslab[3 * H:5 * H, :]                            # (2H, 4H) head Linear(2H,4H) weight^T
    w2 = w2_ref[...]                                       # (4H, Lpad) bf16

    # ---- layer-0 input projection for ALL time steps (hoisted, VPU only) ----
    x_n = (x_ref[...] - mean) * inv_std                    # (B, T)
    xp0 = [x_n[:, t:t + 1] * wih0 + b0 for t in range(T)]  # T x (B, 4H)

    def lstm_cell(pre, c):
        # Full-vreg-width EUP passes (one sigmoid, one tanh over (B, 4H)).
        sg = jax.nn.sigmoid(pre)
        tg = jnp.tanh(pre)
        i_g = sg[:, 0 * H:1 * H]
        f_g = sg[:, 1 * H:2 * H]
        g_g = tg[:, 2 * H:3 * H]
        o_g = sg[:, 3 * H:4 * H]
        c_new = f_g * c + i_g * g_g
        h_new = o_g * jnp.tanh(c_new)
        return h_new, c_new

    h0 = jnp.zeros((B, H), f32)
    c0 = jnp.zeros((B, H), f32)
    h1 = jnp.zeros((B, H), f32)
    c1 = jnp.zeros((B, H), f32)

    # Fully unrolled time loop (T small & static); only the MXU dots sit on
    # the serial critical path.  bf16 operands, f32 accumulation.
    for t in range(T):
        # ---- layer 0 ----
        pre0 = xp0[t] + jnp.dot(h0.astype(bf16), whh0,
                                preferred_element_type=f32)
        h0, c0 = lstm_cell(pre0, c0)

        # ---- layer 1 (fused W_ih/W_hh dot) ----
        h01 = jnp.concatenate([h0, h1], axis=1).astype(bf16)      # (B, 2H)
        pre1 = jnp.dot(h01, wl1, preferred_element_type=f32) + bl1
        h1, c1 = lstm_cell(pre1, c1)

    # ---- head ----
    # prediction_to_latent: Linear(1, H) as a VPU broadcast-mul.
    y_n = (y_ref[...] - mean) * inv_std                    # (B, 1)
    latent2 = y_n * wp + bp                                # (B, H)

    # concat(latent1, latent2) @ W1^T as one fused (B,2H) x (2H,4H) dot.
    hcat = jnp.concatenate([h1, latent2], axis=1).astype(bf16)    # (B, 2H)
    hmid = jnp.dot(hcat, whd, preferred_element_type=f32) + b1
    hmid = jnp.maximum(hmid, 0.0)                          # ReLU

    out = jnp.dot(hmid.astype(bf16), w2, preferred_element_type=f32) + b2
    out_ref[...] = out.astype(out_ref.dtype)


# ---------------------------------------------------------------------------
# Wrapper: single fused pallas_call, no grid.
# ---------------------------------------------------------------------------
def encoder_forward(y, x, packed, *, condition_size, hidden_size, latent_length,
                    mean=0.0, std=1.0):
    if float(std) == 0.0:
        raise ValueError("std must be non-zero")
    B = x.shape[0]
    T, H, L = condition_size, hidden_size, latent_length
    FourH = 4 * H
    Lpad = packed["w2"].shape[1]
    Wmax = packed["rows"].shape[1]

    kernel = functools.partial(encoder_kernel, T=T, B=B, H=H,
                               mean=float(mean), std=float(std))

    # Advisory cost so XLA treats the custom call as tiny.
    flops = (2 * T * B * H * FourH          # layer-0 recurrent dots
             + 2 * T * B * (2 * H) * FourH  # layer-1 fused dots
             + 2 * B * (2 * H) * FourH      # head Linear(2H, 4H)
             + 2 * B * FourH * Lpad)        # head Linear(4H, L)
    transcendentals = 18 * T * B * H        # sigmoid/tanh per LSTM cell
    bytes_accessed = (5 * H * FourH * 2 + FourH * Lpad * 2 + 8 * Wmax * 4
                      + B * T * 4 + B * 4 + B * Lpad * 4)

    vmem = pltpu.MemorySpace.VMEM
    out_pad = pl.pallas_call(
        kernel,
        out_shape=jax.ShapeDtypeStruct((B, Lpad), jnp.float32),
        in_specs=[pl.BlockSpec(memory_space=vmem)] * 5,
        out_specs=pl.BlockSpec(memory_space=vmem),
        cost_estimate=pl.CostEstimate(flops=flops,
                                      transcendentals=transcendentals,
                                      bytes_accessed=bytes_accessed),
        # Working set < 1 MiB: no grid / vmem_limit needed.  If B grows, add a
        # batch-parallel grid axis (dimension_semantics=("parallel",)) so both
        # v7x TensorCores run; if H/T grow, switch the unrolled loop to
        # lax.fori_loop and budget VMEM against 64 MiB (v7x).
    )(x, y.reshape(B, 1), packed["w_slab"], packed["w2"], packed["rows"])

    return out_pad[:, :L]


# ---------------------------------------------------------------------------
# Pure-JAX f32 reference with PyTorch-layout params (semantics of the module).
# ---------------------------------------------------------------------------
def encoder_reference(y, x, raw, *, condition_size, hidden_size,
                      mean=0.0, std=1.0):
    B = x.shape[0]
    T, H = condition_size, hidden_size
    xn = (x - mean) / std
    x_t = xn.T                                             # (T, B)

    def cell(pre, c):
        i = jax.nn.sigmoid(pre[:, :H])
        f = jax.nn.sigmoid(pre[:, H:2 * H])
        g = jnp.tanh(pre[:, 2 * H:3 * H])
        o = jax.nn.sigmoid(pre[:, 3 * H:])
        c = f * c + i * g
        return o * jnp.tanh(c), c

    h0 = c0 = h1 = c1 = jnp.zeros((B, H), jnp.float32)
    for t in range(T):
        pre0 = (x_t[t][:, None] @ raw["w_ih_l0"].T + h0 @ raw["w_hh_l0"].T
                + raw["b_ih_l0"] + raw["b_hh_l0"])
        h0, c0 = cell(pre0, c0)
        pre1 = (h0 @ raw["w_ih_l1"].T + h1 @ raw["w_hh_l1"].T
                + raw["b_ih_l1"] + raw["b_hh_l1"])
        h1, c1 = cell(pre1, c1)

    yn = ((y - mean) / std).reshape(B, 1)
    latent2 = yn @ raw["wp"].T + raw["bp"]
    hcat = jnp.concatenate([h1, latent2], axis=1)
    hmid = jnp.maximum(hcat @ raw["w1"].T + raw["b1"], 0.0)
    return hmid @ raw["w2"].T + raw["b2"]


# ---------------------------------------------------------------------------
# Deterministic parameter construction: raw PyTorch-shaped params + packed
# kernel slabs (2 bf16 weight slabs + 1 f32 row slab).
# ---------------------------------------------------------------------------
def make_params(key, hidden_size, latent_length):
    H, L = hidden_size, latent_length
    FourH = 4 * H
    Lpad = ((L + 127) // 128) * 128
    Wmax = max(FourH, H, Lpad)
    ks = jax.random.split(key, 14)
    u = lambda k, shape: jax.random.uniform(k, shape, jnp.float32, -0.1, 0.1)

    raw = {
        # nn.LSTM(input_size=1, hidden_size=H, num_layers=2)
        "w_ih_l0": u(ks[0], (FourH, 1)),
        "w_hh_l0": u(ks[1], (FourH, H)),
        "b_ih_l0": u(ks[2], (FourH,)),
        "b_hh_l0": u(ks[3], (FourH,)),
        "w_ih_l1": u(ks[4], (FourH, H)),
        "w_hh_l1": u(ks[5], (FourH, H)),
        "b_ih_l1": u(ks[6], (FourH,)),
        "b_hh_l1": u(ks[7], (FourH,)),
        # nn.Linear(1, H)
        "wp": u(ks[8], (H, 1)),
        "bp": u(ks[9], (H,)),
        # nn.Sequential(Linear(2H, 4H), ReLU, Linear(4H, L))
        "w1": u(ks[10], (FourH, 2 * H)),
        "b1": u(ks[11], (FourH,)),
        "w2": u(ks[12], (L, FourH)),
        "b2": u(ks[13], (L,)),
    }

    # Slab 1: every (., 4H) weight stacked on rows (bf16 for the MXU):
    #   [w_hh_l0^T ; w_ih_l1^T ; w_hh_l1^T ; w1^T]  -> (5H, 4H)
    w_slab = jnp.concatenate(
        [raw["w_hh_l0"].T, raw["w_ih_l1"].T, raw["w_hh_l1"].T, raw["w1"].T],
        axis=0).astype(jnp.bfloat16)

    # Slab 2: final projection, zero-padded to a lane-dense Lpad (bf16).
    w2_pad = (jnp.zeros((FourH, Lpad), jnp.float32)
              .at[:, :L].set(raw["w2"].T).astype(jnp.bfloat16))

    # Slab 3: all row-vector params (K=1 weights + biases), one f32 slab.
    rows = jnp.zeros((8, Wmax), jnp.float32)
    rows = rows.at[_ROW_WIH0, :FourH].set(raw["w_ih_l0"][:, 0])
    rows = rows.at[_ROW_B0, :FourH].set(raw["b_ih_l0"] + raw["b_hh_l0"])
    rows = rows.at[_ROW_BL1, :FourH].set(raw["b_ih_l1"] + raw["b_hh_l1"])
    rows = rows.at[_ROW_WP, :H].set(raw["wp"][:, 0])
    rows = rows.at[_ROW_BP, :H].set(raw["bp"])
    rows = rows.at[_ROW_B1, :FourH].set(raw["b1"])
    rows = rows.at[_ROW_B2, :L].set(raw["b2"])

    packed = {"w_slab": w_slab, "w2": w2_pad, "rows": rows}
    return packed, raw


if __name__ == "__main__":
    batch = 2
    condition_size = 8
    hidden_size = 32
    latent_length = 16
    mean, std = 0.0, 1.0

    key = jax.random.PRNGKey(0)
    k_p, k_x, k_y = jax.random.split(key, 3)
    packed, raw = make_params(k_p, hidden_size, latent_length)

    x = jax.random.normal(k_x, (batch, condition_size), jnp.float32)  # condition window
    y = jax.random.normal(k_y, (batch, 1), jnp.float32)               # future data

    out = encoder_forward(y, x, packed,
                          condition_size=condition_size,
                          hidden_size=hidden_size,
                          latent_length=latent_length,
                          mean=mean, std=std)
    out = jax.block_until_ready(out)

    assert out.shape == (batch, latent_length), out.shape
    assert bool(jnp.all(jnp.isfinite(out)))

    ref = encoder_reference(y, x, raw,
                            condition_size=condition_size,
                            hidden_size=hidden_size,
                            mean=mean, std=std)
    max_err = float(jnp.max(jnp.abs(out - ref)))
    # bf16 MXU operands with f32 accumulation => bf16-level tolerance vs f32 ref.
    assert jnp.allclose(out, ref, rtol=2e-2, atol=2e-2), max_err

    print("KERNEL_OK")
</pallas_src>

<mosaic_0001>
module attributes {stable_mosaic.version = 11 : i64} {
  func.func @encoder_kernel(%arg0: memref<2x8xf32, #tpu.memory_space<vmem>>, %arg1: memref<2x1xf32, #tpu.memory_space<vmem>>, %arg2: memref<160x128xbf16, #tpu.memory_space<vmem>>, %arg3: memref<128x128xbf16, #tpu.memory_space<vmem>>, %arg4: memref<8x128xf32, #tpu.memory_space<vmem>>, %arg5: memref<2x128xf32, #tpu.memory_space<vmem>>) attributes {dimension_semantics = [], scalar_prefetch = 0 : i64, scratch_operands = 0 : i64, tpu.core_type = #tpu.core_type<tc>} {
    %c0 = arith.constant 0 : index
    %c0_0 = arith.constant 0 : index
    %0 = vector.load %arg4[%c0, %c0_0] : memref<8x128xf32, #tpu.memory_space<vmem>>, vector<8x128xf32>
    %1 = vector.extract_strided_slice %0 {offsets = [0, 0], sizes = [1, 128], strides = [1, 1]} : vector<8x128xf32> to vector<1x128xf32>
    %2 = vector.extract_strided_slice %0 {offsets = [1, 0], sizes = [1, 128], strides = [1, 1]} : vector<8x128xf32> to vector<1x128xf32>
    %3 = vector.extract_strided_slice %0 {offsets = [2, 0], sizes = [1, 128], strides = [1, 1]} : vector<8x128xf32> to vector<1x128xf32>
    %4 = vector.extract_strided_slice %0 {offsets = [3, 0], sizes = [1, 32], strides = [1, 1]} : vector<8x128xf32> to vector<1x32xf32>
    %5 = vector.extract_strided_slice %0 {offsets = [4, 0], sizes = [1, 32], strides = [1, 1]} : vector<8x128xf32> to vector<1x32xf32>
    %6 = vector.extract_strided_slice %0 {offsets = [5, 0], sizes = [1, 128], strides = [1, 1]} : vector<8x128xf32> to vector<1x128xf32>
    %7 = vector.extract_strided_slice %0 {offsets = [6, 0], sizes = [1, 128], strides = [1, 1]} : vector<8x128xf32> to vector<1x128xf32>
    %c0_1 = arith.constant 0 : index
    %c0_2 = arith.constant 0 : index
    %8 = vector.load %arg2[%c0_1, %c0_2] : memref<160x128xbf16, #tpu.memory_space<vmem>>, vector<160x128xbf16>
    %9 = vector.extract_strided_slice %8 {offsets = [0, 0], sizes = [32, 128], strides = [1, 1]} : vector<160x128xbf16> to vector<32x128xbf16>
    %10 = vector.extract_strided_slice %8 {offsets = [32, 0], sizes = [64, 128], strides = [1, 1]} : vector<160x128xbf16> to vector<64x128xbf16>
    %11 = vector.extract_strided_slice %8 {offsets = [96, 0], sizes = [64, 128], strides = [1, 1]} : vector<160x128xbf16> to vector<64x128xbf16>
    %c0_3 = arith.constant 0 : index
    %c0_4 = arith.constant 0 : index
    %12 = vector.load %arg3[%c0_3, %c0_4] : memref<128x128xbf16, #tpu.memory_space<vmem>>, vector<128x128xbf16>
    %c0_5 = arith.constant 0 : index
    %c0_6 = arith.constant 0 : index
    %13 = vector.load %arg0[%c0_5, %c0_6] : memref<2x8xf32, #tpu.memory_space<vmem>>, vector<2x8xf32>
    %cst = arith.constant 0.000000e+00 : f32
    %14 = vector.broadcast %cst : f32 to vector<2x8xf32>
    %15 = arith.subf %13, %14 : vector<2x8xf32>
    %cst_7 = arith.constant 1.000000e+00 : f32
    %16 = vector.broadcast %cst_7 : f32 to vector<2x8xf32>
    %17 = arith.mulf %15, %16 : vector<2x8xf32>
    %18 = vector.extract_strided_slice %17 {offsets = [0, 0], sizes = [2, 1], strides = [1, 1]} : vector<2x8xf32> to vector<2x1xf32>
    %19 = vector.broadcast %18 : vector<2x1xf32> to vector<2x128xf32>
    %20 = vector.broadcast %1 : vector<1x128xf32> to vector<2x128xf32>
    %21 = arith.mulf %19, %20 : vector<2x128xf32>
    %22 = vector.broadcast %2 : vector<1x128xf32> to vector<2x128xf32>
    %23 = arith.addf %21, %22 : vector<2x128xf32>
    %24 = vector.extract_strided_slice %17 {offsets = [0, 1], sizes = [2, 1], strides = [1, 1]} : vector<2x8xf32> to vector<2x1xf32>
    %25 = vector.broadcast %24 : vector<2x1xf32> to vector<2x128xf32>
    %26 = vector.broadcast %1 : vector<1x128xf32> to vector<2x128xf32>
    %27 = arith.mulf %25, %26 : vector<2x128xf32>
    %28 = vector.broadcast %2 : vector<1x128xf32> to vector<2x128xf32>
    %29 = arith.addf %27, %28 : vector<2x128xf32>
    %30 = vector.extract_strided_slice %17 {offsets = [0, 2], sizes = [2, 1], strides = [1, 1]} : vector<2x8xf32> to vector<2x1xf32>
    %31 = vector.broadcast %30 : vector<2x1xf32> to vector<2x128xf32>
    %32 = vector.broadcast %1 : vector<1x128xf32> to vector<2x128xf32>
    %33 = arith.mulf %31, %32 : vector<2x128xf32>
    %34 = vector.broadcast %2 : vector<1x128xf32> to vector<2x128xf32>
    %35 = arith.addf %33, %34 : vector<2x128xf32>
    %36 = vector.extract_strided_slice %17 {offsets = [0, 3], sizes = [2, 1], strides = [1, 1]} : vector<2x8xf32> to vector<2x1xf32>
    %37 = vector.broadcast %36 : vector<2x1xf32> to vector<2x128xf32>
    %38 = vector.broadcast %1 : vector<1x128xf32> to vector<2x128xf32>
    %39 = arith.mulf %37, %38 : vector<2x128xf32>
    %40 = vector.broadcast %2 : vector<1x128xf32> to vector<2x128xf32>
    %41 = arith.addf %39, %40 : vector<2x128xf32>
    %42 = vector.extract_strided_slice %17 {offsets = [0, 4], sizes = [2, 1], strides = [1, 1]} : vector<2x8xf32> to vector<2x1xf32>
    %43 = vector.broadcast %42 : vector<2x1xf32> to vector<2x128xf32>
    %44 = vector.broadcast %1 : vector<1x128xf32> to vector<2x128xf32>
    %45 = arith.mulf %43, %44 : vector<2x128xf32>
    %46 = vector.broadcast %2 : vector<1x128xf32> to vector<2x128xf32>
    %47 = arith.addf %45, %46 : vector<2x128xf32>
    %48 = vector.extract_strided_slice %17 {offsets = [0, 5], sizes = [2, 1], strides = [1, 1]} : vector<2x8xf32> to vector<2x1xf32>
    %49 = vector.broadcast %48 : vector<2x1xf32> to vector<2x128xf32>
    %50 = vector.broadcast %1 : vector<1x128xf32> to vector<2x128xf32>
    %51 = arith.mulf %49, %50 : vector<2x128xf32>
    %52 = vector.broadcast %2 : vector<1x128xf32> to vector<2x128xf32>
    %53 = arith.addf %51, %52 : vector<2x128xf32>
    %54 = vector.extract_strided_slice %17 {offsets = [0, 6], sizes = [2, 1], strides = [1, 1]} : vector<2x8xf32> to vector<2x1xf32>
    %55 = vector.broadcast %54 : vector<2x1xf32> to vector<2x128xf32>
    %56 = vector.broadcast %1 : vector<1x128xf32> to vector<2x128xf32>
    %57 = arith.mulf %55, %56 : vector<2x128xf32>
    %58 = vector.broadcast %2 : vector<1x128xf32> to vector<2x128xf32>
    %59 = arith.addf %57, %58 : vector<2x128xf32>
    %60 = vector.extract_strided_slice %17 {offsets = [0, 7], sizes = [2, 1], strides = [1, 1]} : vector<2x8xf32> to vector<2x1xf32>
    %61 = vector.broadcast %60 : vector<2x1xf32> to vector<2x128xf32>
    %62 = vector.broadcast %1 : vector<1x128xf32> to vector<2x128xf32>
    %63 = arith.mulf %61, %62 : vector<2x128xf32>
    %64 = vector.broadcast %2 : vector<1x128xf32> to vector<2x128xf32>
    %65 = arith.addf %63, %64 : vector<2x128xf32>
    %cst_8 = arith.constant 0.000000e+00 : f32
    %66 = vector.broadcast %cst_8 : f32 to vector<2x32xf32>
    %cst_9 = arith.constant 0.000000e+00 : f32
    %67 = vector.broadcast %cst_9 : f32 to vector<2x32xf32>
    %cst_10 = arith.constant 0.000000e+00 : f32
    %68 = vector.broadcast %cst_10 : f32 to vector<2x32xf32>
    %cst_11 = arith.constant 0.000000e+00 : f32
    %69 = vector.broadcast %cst_11 : f32 to vector<2x32xf32>
    %70 = arith.truncf %66 : vector<2x32xf32> to vector<2x32xbf16>
    %cst_12 = arith.constant dense<0.000000e+00> : vector<2x128xf32>
    %71 = tpu.matmul %70, %9, %cst_12 {dimension_numbers = #tpu.dot_dimension_numbers<[1], [0], [0], [1], [0, 0, 1, 1], [], []>} : vector<2x32xbf16>, vector<32x128xbf16>, vector<2x128xf32> -> vector<2x128xf32>
    %72 = arith.addf %23, %71 : vector<2x128xf32>
    %73 = arith.negf %72 : vector<2x128xf32>
    %74 = math.exp %73 : vector<2x128xf32>
    %cst_13 = arith.constant 1.000000e+00 : f32
    %75 = vector.broadcast %cst_13 : f32 to vector<2x128xf32>
    %76 = arith.addf %75, %74 : vector<2x128xf32>
    %77 = arith.divf %75, %76 : vector<2x128xf32>
    %78 = math.tanh %72 : vector<2x128xf32>
    %79 = vector.extract_strided_slice %77 {offsets = [0, 0], sizes = [2, 32], strides = [1, 1]} : vector<2x128xf32> to vector<2x32xf32>
    %80 = vector.extract_strided_slice %77 {offsets = [0, 32], sizes = [2, 32], strides = [1, 1]} : vector<2x128xf32> to vector<2x32xf32>
    %81 = vector.extract_strided_slice %78 {offsets = [0, 64], sizes = [2, 32], strides = [1, 1]} : vector<2x128xf32> to vector<2x32xf32>
    %82 = vector.extract_strided_slice %77 {offsets = [0, 96], sizes = [2, 32], strides = [1, 1]} : vector<2x128xf32> to vector<2x32xf32>
    %83 = arith.mulf %80, %67 : vector<2x32xf32>
    %84 = arith.mulf %79, %81 : vector<2x32xf32>
    %85 = arith.addf %83, %84 : vector<2x32xf32>
    %86 = math.tanh %85 : vector<2x32xf32>
    %87 = arith.mulf %82, %86 : vector<2x32xf32>
    %88 = tpu.concatenate %87, %68 in 1 : vector<2x32xf32>, vector<2x32xf32> -> vector<2x64xf32>
    %89 = arith.truncf %88 : vector<2x64xf32> to vector<2x64xbf16>
    %cst_14 = arith.constant dense<0.000000e+00> : vector<2x128xf32>
    %90 = tpu.matmul %89, %10, %cst_14 {dimension_numbers = #tpu.dot_dimension_numbers<[1], [0], [0], [1], [0, 0, 1, 1], [], []>} : vector<2x64xbf16>, vector<64x128xbf16>, vector<2x128xf32> -> vector<2x128xf32>
    %91 = vector.broadcast %3 : vector<1x128xf32> to vector<2x128xf32>
    %92 = arith.addf %90, %91 : vector<2x128xf32>
    %93 = arith.negf %92 : vector<2x128xf32>
    %94 = math.exp %93 : vector<2x128xf32>
    %cst_15 = arith.constant 1.000000e+00 : f32
    %95 = vector.broadcast %cst_15 : f32 to vector<2x128xf32>
    %96 = arith.addf %95, %94 : vector<2x128xf32>
    %97 = arith.divf %95, %96 : vector<2x128xf32>
    %98 = math.tanh %92 : vector<2x128xf32>
    %99 = vector.extract_strided_slice %97 {offsets = [0, 0], sizes = [2, 32], strides = [1, 1]} : vector<2x128xf32> to vector<2x32xf32>
    %100 = vector.extract_strided_slice %97 {offsets = [0, 32], sizes = [2, 32], strides = [1, 1]} : vector<2x128xf32> to vector<2x32xf32>
    %101 = vector.extract_strided_slice %98 {offsets = [0, 64], sizes = [2, 32], strides = [1, 1]} : vector<2x128xf32> to vector<2x32xf32>
    %102 = vector.extract_strided_slice %97 {offsets = [0, 96], sizes = [2, 32], strides = [1, 1]} : vector<2x128xf32> to vector<2x32xf32>
    %103 = arith.mulf %100, %69 : vector<2x32xf32>
    %104 = arith.mulf %99, %101 : vector<2x32xf32>
    %105 = arith.addf %103, %104 : vector<2x32xf32>
    %106 = math.tanh %105 : vector<2x32xf32>
    %107 = arith.mulf %102, %106 : vector<2x32xf32>
    %108 = arith.truncf %87 : vector<2x32xf32> to vector<2x32xbf16>
    %cst_16 = arith.constant dense<0.000000e+00> : vector<2x128xf32>
    %109 = tpu.matmul %108, %9, %cst_16 {dimension_numbers = #tpu.dot_dimension_numbers<[1], [0], [0], [1], [0, 0, 1, 1], [], []>} : vector<2x32xbf16>, vector<32x128xbf16>, vector<2x128xf32> -> vector<2x128xf32>
    %110 = arith.addf %29, %109 : vector<2x128xf32>
    %111 = arith.negf %110 : vector<2x128xf32>
    %112 = math.exp %111 : vector<2x128xf32>
    %cst_17 = arith.constant 1.000000e+00 : f32
    %113 = vector.broadcast %cst_17 : f32 to vector<2x128xf32>
    %114 = arith.addf %113, %112 : vector<2x128xf32>
    %115 = arith.divf %113, %114 : vector<2x128xf32>
    %116 = math.tanh %110 : vector<2x128xf32>
    %117 = vector.extract_strided_slice %115 {offsets = [0, 0], sizes = [2, 32], strides = [1, 1]} : vector<2x128xf32> to vector<2x32xf32>
    %118 = vector.extract_strided_slice %115 {offsets = [0, 32], sizes = [2, 32], strides = [1, 1]} : vector<2x128xf32> to vector<2x32xf32>
    %119 = vector.extract_strided_slice %116 {offsets = [0, 64], sizes = [2, 32], strides = [1, 1]} : vector<2x128xf32> to vector<2x32xf32>
    %120 = vector.extract_strided_slice %115 {offsets = [0, 96], sizes = [2, 32], strides = [1, 1]} : vector<2x128xf32> to vector<2x32xf32>
    %121 = arith.mulf %118, %85 : vector<2x32xf32>
    %122 = arith.mulf %117, %119 : vector<2x32xf32>
    %123 = arith.addf %121, %122 : vector<2x32xf32>
    %124 = math.tanh %123 : vector<2x32xf32>
    %125 = arith.mulf %120, %124 : vector<2x32xf32>
    %126 = tpu.concatenate %125, %107 in 1 : vector<2x32xf32>, vector<2x32xf32> -> vector<2x64xf32>
    %127 = arith.truncf %126 : vector<2x64xf32> to vector<2x64xbf16>
    %cst_18 = arith.constant dense<0.000000e+00> : vector<2x128xf32>
    %128 = tpu.matmul %127, %10, %cst_18 {dimension_numbers = #tpu.dot_dimension_numbers<[1], [0], [0], [1], [0, 0, 1, 1], [], []>} : vector<2x64xbf16>, vector<64x128xbf16>, vector<2x128xf32> -> vector<2x128xf32>
    %129 = vector.broadcast %3 : vector<1x128xf32> to vector<2x128xf32>
    %130 = arith.addf %128, %129 : vector<2x128xf32>
    %131 = arith.negf %130 : vector<2x128xf32>
    %132 = math.exp %131 : vector<2x128xf32>
    %cst_19 = arith.constant 1.000000e+00 : f32
    %133 = vector.broadcast %cst_19 : f32 to vector<2x128xf32>
    %134 = arith.addf %133, %132 : vector<2x128xf32>
    %135 = arith.divf %133, %134 : vector<2x128xf32>
    %136 = math.tanh %130 : vector<2x128xf32>
    %137 = vector.extract_strided_slice %135 {offsets = [0, 0], sizes = [2, 32], strides = [1, 1]} : vector<2x128xf32> to vector<2x32xf32>
    %138 = vector.extract_strided_slice %135 {offsets = [0, 32], sizes = [2, 32], strides = [1, 1]} : vector<2x128xf32> to vector<2x32xf32>
    %139 = vector.extract_strided_slice %136 {offsets = [0, 64], sizes = [2, 32], strides = [1, 1]} : vector<2x128xf32> to vector<2x32xf32>
    %140 = vector.extract_strided_slice %135 {offsets = [0, 96], sizes = [2, 32], strides = [1, 1]} : vector<2x128xf32> to vector<2x32xf32>
    %141 = arith.mulf %138, %105 : vector<2x32xf32>
    %142 = arith.mulf %137, %139 : vector<2x32xf32>
    %143 = arith.addf %141, %142 : vector<2x32xf32>
    %144 = math.tanh %143 : vector<2x32xf32>
    %145 = arith.mulf %140, %144 : vector<2x32xf32>
    %146 = arith.truncf %125 : vector<2x32xf32> to vector<2x32xbf16>
    %cst_20 = arith.constant dense<0.000000e+00> : vector<2x128xf32>
    %147 = tpu.matmul %146, %9, %cst_20 {dimension_numbers = #tpu.dot_dimension_numbers<[1], [0], [0], [1], [0, 0, 1, 1], [], []>} : vector<2x32xbf16>, vector<32x128xbf16>, vector<2x128xf32> -> vector<2x128xf32>
    %148 = arith.addf %35, %147 : vector<2x128xf32>
    %149 = arith.negf %148 : vector<2x128xf32>
    %150 = math.exp %149 : vector<2x128xf32>
    %cst_21 = arith.constant 1.000000e+00 : f32
    %151 = vector.broadcast %cst_21 : f32 to vector<2x128xf32>
    %152 = arith.addf %151, %150 : vector<2x128xf32>
    %153 = arith.divf %151, %152 : vector<2x128xf32>
    %154 = math.tanh %148 : vector<2x128xf32>
    %155 = vector.extract_strided_slice %153 {offsets = [0, 0], sizes = [2, 32], strides = [1, 1]} : vector<2x128xf32> to vector<2x32xf32>
    %156 = vector.extract_strided_slice %153 {offsets = [0, 32], sizes = [2, 32], strides = [1, 1]} : vector<2x128xf32> to vector<2x32xf32>
    %157 = vector.extract_strided_slice %154 {offsets = [0, 64], sizes = [2, 32], strides = [1, 1]} : vector<2x128xf32> to vector<2x32xf32>
    %158 = vector.extract_strided_slice %153 {offsets = [0, 96], sizes = [2, 32], strides = [1, 1]} : vector<2x128xf32> to vector<2x32xf32>
    %159 = arith.mulf %156, %123 : vector<2x32xf32>
    %160 = arith.mulf %155, %157 : vector<2x32xf32>
    %161 = arith.addf %159, %160 : vector<2x32xf32>
    %162 = math.tanh %161 : vector<2x32xf32>
    %163 = arith.mulf %158, %162 : vector<2x32xf32>
    %164 = tpu.concatenate %163, %145 in 1 : vector<2x32xf32>, vector<2x32xf32> -> vector<2x64xf32>
    %165 = arith.truncf %164 : vector<2x64xf32> to vector<2x64xbf16>
    %cst_22 = arith.constant dense<0.000000e+00> : vector<2x128xf32>
    %166 = tpu.matmul %165, %10, %cst_22 {dimension_numbers = #tpu.dot_dimension_numbers<[1], [0], [0], [1], [0, 0, 1, 1], [], []>} : vector<2x64xbf16>, vector<64x128xbf16>, vector<2x128xf32> -> vector<2x128xf32>
    %167 = vector.broadcast %3 : vector<1x128xf32> to vector<2x128xf32>
    %168 = arith.addf %166, %167 : vector<2x128xf32>
    %169 = arith.negf %168 : vector<2x128xf32>
    %170 = math.exp %169 : vector<2x128xf32>
    %cst_23 = arith.constant 1.000000e+00 : f32
    %171 = vector.broadcast %cst_23 : f32 to vector<2x128xf32>
    %172 = arith.addf %171, %170 : vector<2x128xf32>
    %173 = arith.divf %171, %172 : vector<2x128xf32>
    %174 = math.tanh %168 : vector<2x128xf32>
    %175 = vector.extract_strided_slice %173 {offsets = [0, 0], sizes = [2, 32], strides = [1, 1]} : vector<2x128xf32> to vector<2x32xf32>
    %176 = vector.extract_strided_slice %173 {offsets = [0, 32], sizes = [2, 32], strides = [1, 1]} : vector<2x128xf32> to vector<2x32xf32>
    %177 = vector.extract_strided_slice %174 {offsets = [0, 64], sizes = [2, 32], strides = [1, 1]} : vector<2x128xf32> to vector<2x32xf32>
    %178 = vector.extract_strided_slice %173 {offsets = [0, 96], sizes = [2, 32], strides = [1, 1]} : vector<2x128xf32> to vector<2x32xf32>
    %179 = arith.mulf %176, %143 : vector<2x32xf32>
    %180 = arith.mulf %175, %177 : vector<2x32xf32>
    %181 = arith.addf %179, %180 : vector<2x32xf32>
    %182 = math.tanh %181 : vector<2x32xf32>
    %183 = arith.mulf %178, %182 : vector<2x32xf32>
    %184 = arith.truncf %163 : vector<2x32xf32> to vector<2x32xbf16>
    %cst_24 = arith.constant dense<0.000000e+00> : vector<2x128xf32>
    %185 = tpu.matmul %184, %9, %cst_24 {dimension_numbers = #tpu.dot_dimension_numbers<[1], [0], [0], [1], [0, 0, 1, 1], [], []>} : vector<2x32xbf16>, vector<32x128xbf16>, vector<2x128xf32> -> vector<2x128xf32>
    %186 = arith.addf %41, %185 : vector<2x128xf32>
    %187 = arith.negf %186 : vector<2x128xf32>
    %188 = math.exp %187 : vector<2x128xf32>
    %cst_25 = arith.constant 1.000000e+00 : f32
    %189 = vector.broadcast %cst_25 : f32 to vector<2x128xf32>
    %190 = arith.addf %189, %188 : vector<2x128xf32>
    %191 = arith.divf %189, %190 : vector<2x128xf32>
    %192 = math.tanh %186 : vector<2x128xf32>
    %193 = vector.extract_strided_slice %191 {offsets = [0, 0], sizes = [2, 32], strides = [1, 1]} : vector<2x128xf32> to vector<2x32xf32>
    %194 = vector.extract_strided_slice %191 {offsets = [0, 32], sizes = [2, 32], strides = [1, 1]} : vector<2x128xf32> to vector<2x32xf32>
    %195 = vector.extract_strided_slice %192 {offsets = [0, 64], sizes = [2, 32], strides = [1, 1]} : vector<2x128xf32> to vector<2x32xf32>
    %196 = vector.extract_strided_slice %191 {offsets = [0, 96], sizes = [2, 32], strides = [1, 1]} : vector<2x128xf32> to vector<2x32xf32>
    %197 = arith.mulf %194, %161 : vector<2x32xf32>
    %198 = arith.mulf %193, %195 : vector<2x32xf32>
    %199 = arith.addf %197, %198 : vector<2x32xf32>
    %200 = math.tanh %199 : vector<2x32xf32>
    %201 = arith.mulf %196, %200 : vector<2x32xf32>
    %202 = tpu.concatenate %201, %183 in 1 : vector<2x32xf32>, vector<2x32xf32> -> vector<2x64xf32>
    %203 = arith.truncf %202 : vector<2x64xf32> to vector<2x64xbf16>
    %cst_26 = arith.constant dense<0.000000e+00> : vector<2x128xf32>
    %204 = tpu.matmul %203, %10, %cst_26 {dimension_numbers = #tpu.dot_dimension_numbers<[1], [0], [0], [1], [0, 0, 1, 1], [], []>} : vector<2x64xbf16>, vector<64x128xbf16>, vector<2x128xf32> -> vector<2x128xf32>
    %205 = vector.broadcast %3 : vector<1x128xf32> to vector<2x128xf32>
    %206 = arith.addf %204, %205 : vector<2x128xf32>
    %207 = arith.negf %206 : vector<2x128xf32>
    %208 = math.exp %207 : vector<2x128xf32>
    %cst_27 = arith.constant 1.000000e+00 : f32
    %209 = vector.broadcast %cst_27 : f32 to vector<2x128xf32>
    %210 = arith.addf %209, %208 : vector<2x128xf32>
    %211 = arith.divf %209, %210 : vector<2x128xf32>
    %212 = math.tanh %206 : vector<2x128xf32>
    %213 = vector.extract_strided_slice %211 {offsets = [0, 0], sizes = [2, 32], strides = [1, 1]} : vector<2x128xf32> to vector<2x32xf32>
    %214 = vector.extract_strided_slice %211 {offsets = [0, 32], sizes = [2, 32], strides = [1, 1]} : vector<2x128xf32> to vector<2x32xf32>
    %215 = vector.extract_strided_slice %212 {offsets = [0, 64], sizes = [2, 32], strides = [1, 1]} : vector<2x128xf32> to vector<2x32xf32>
    %216 = vector.extract_strided_slice %211 {offsets = [0, 96], sizes = [2, 32], strides = [1, 1]} : vector<2x128xf32> to vector<2x32xf32>
    %217 = arith.mulf %214, %181 : vector<2x32xf32>
    %218 = arith.mulf %213, %215 : vector<2x32xf32>
    %219 = arith.addf %217, %218 : vector<2x32xf32>
    %220 = math.tanh %219 : vector<2x32xf32>
    %221 = arith.mulf %216, %220 : vector<2x32xf32>
    %222 = arith.truncf %201 : vector<2x32xf32> to vector<2x32xbf16>
    %cst_28 = arith.constant dense<0.000000e+00> : vector<2x128xf32>
    %223 = tpu.matmul %222, %9, %cst_28 {dimension_numbers = #tpu.dot_dimension_numbers<[1], [0], [0], [1], [0, 0, 1, 1], [], []>} : vector<2x32xbf16>, vector<32x128xbf16>, vector<2x128xf32> -> vector<2x128xf32>
    %224 = arith.addf %47, %223 : vector<2x128xf32>
    %225 = arith.negf %224 : vector<2x128xf32>
    %226 = math.exp %225 : vector<2x128xf32>
    %cst_29 = arith.constant 1.000000e+00 : f32
    %227 = vector.broadcast %cst_29 : f32 to vector<2x128xf32>
    %228 = arith.addf %227, %226 : vector<2x128xf32>
    %229 = arith.divf %227, %228 : vector<2x128xf32>
    %230 = math.tanh %224 : vector<2x128xf32>
    %231 = vector.extract_strided_slice %229 {offsets = [0, 0], sizes = [2, 32], strides = [1, 1]} : vector<2x128xf32> to vector<2x32xf32>
    %232 = vector.extract_strided_slice %229 {offsets = [0, 32], sizes = [2, 32], strides = [1, 1]} : vector<2x128xf32> to vector<2x32xf32>
    %233 = vector.extract_strided_slice %230 {offsets = [0, 64], sizes = [2, 32], strides = [1, 1]} : vector<2x128xf32> to vector<2x32xf32>
    %234 = vector.extract_strided_slice %229 {offsets = [0, 96], sizes = [2, 32], strides = [1, 1]} : vector<2x128xf32> to vector<2x32xf32>
    %235 = arith.mulf %232, %199 : vector<2x32xf32>
    %236 = arith.mulf %231, %233 : vector<2x32xf32>
    %237 = arith.addf %235, %236 : vector<2x32xf32>
    %238 = math.tanh %237 : vector<2x32xf32>
    %239 = arith.mulf %234, %238 : vector<2x32xf32>
    %240 = tpu.concatenate %239, %221 in 1 : vector<2x32xf32>, vector<2x32xf32> -> vector<2x64xf32>
    %241 = arith.truncf %240 : vector<2x64xf32> to vector<2x64xbf16>
    %cst_30 = arith.constant dense<0.000000e+00> : vector<2x128xf32>
    %242 = tpu.matmul %241, %10, %cst_30 {dimension_numbers = #tpu.dot_dimension_numbers<[1], [0], [0], [1], [0, 0, 1, 1], [], []>} : vector<2x64xbf16>, vector<64x128xbf16>, vector<2x128xf32> -> vector<2x128xf32>
    %243 = vector.broadcast %3 : vector<1x128xf32> to vector<2x128xf32>
    %244 = arith.addf %242, %243 : vector<2x128xf32>
    %245 = arith.negf %244 : vector<2x128xf32>
    %246 = math.exp %245 : vector<2x128xf32>
    %cst_31 = arith.constant 1.000000e+00 : f32
    %247 = vector.broadcast %cst_31 : f32 to vector<2x128xf32>
    %248 = arith.addf %247, %246 : vector<2x128xf32>
    %249 = arith.divf %247, %248 : vector<2x128xf32>
    %250 = math.tanh %244 : vector<2x128xf32>
    %251 = vector.extract_strided_slice %249 {offsets = [0, 0], sizes = [2, 32], strides = [1, 1]} : vector<2x128xf32> to vector<2x32xf32>
    %252 = vector.extract_strided_slice %249 {offsets = [0, 32], sizes = [2, 32], strides = [1, 1]} : vector<2x128xf32> to vector<2x32xf32>
    %253 = vector.extract_strided_slice %250 {offsets = [0, 64], sizes = [2, 32], strides = [1, 1]} : vector<2x128xf32> to vector<2x32xf32>
    %254 = vector.extract_strided_slice %249 {offsets = [0, 96], sizes = [2, 32], strides = [1, 1]} : vector<2x128xf32> to vector<2x32xf32>
    %255 = arith.mulf %252, %219 : vector<2x32xf32>
    %256 = arith.mulf %251, %253 : vector<2x32xf32>
    %257 = arith.addf %255, %256 : vector<2x32xf32>
    %258 = math.tanh %257 : vector<2x32xf32>
    %259 = arith.mulf %254, %258 : vector<2x32xf32>
    %260 = arith.truncf %239 : vector<2x32xf32> to vector<2x32xbf16>
    %cst_32 = arith.constant dense<0.000000e+00> : vector<2x128xf32>
    %261 = tpu.matmul %260, %9, %cst_32 {dimension_numbers = #tpu.dot_dimension_numbers<[1], [0], [0], [1], [0, 0, 1, 1], [], []>} : vector<2x32xbf16>, vector<32x128xbf16>, vector<2x128xf32> -> vector<2x128xf32>
    %262 = arith.addf %53, %261 : vector<2x128xf32>
    %263 = arith.negf %262 : vector<2x128xf32>
    %264 = math.exp %263 : vector<2x128xf32>
    %cst_33 = arith.constant 1.000000e+00 : f32
    %265 = vector.broadcast %cst_33 : f32 to vector<2x128xf32>
    %266 = arith.addf %265, %264 : vector<2x128xf32>
    %267 = arith.divf %265, %266 : vector<2x128xf32>
    %268 = math.tanh %262 : vector<2x128xf32>
    %269 = vector.extract_strided_slice %267 {offsets = [0, 0], sizes = [2, 32], strides = [1, 1]} : vector<2x128xf32> to vector<2x32xf32>
    %270 = vector.extract_strided_slice %267 {offsets = [0, 32], sizes = [2, 32], strides = [1, 1]} : vector<2x128xf32> to vector<2x32xf32>
    %271 = vector.extract_strided_slice %268 {offsets = [0, 64], sizes = [2, 32], strides = [1, 1]} : vector<2x128xf32> to vector<2x32xf32>
    %272 = vector.extract_strided_slice %267 {offsets = [0, 96], sizes = [2, 32], strides = [1, 1]} : vector<2x128xf32> to vector<2x32xf32>
    %273 = arith.mulf %270, %237 : vector<2x32xf32>
    %274 = arith.mulf %269, %271 : vector<2x32xf32>
    %275 = arith.addf %273, %274 : vector<2x32xf32>
    %276 = math.tanh %275 : vector<2x32xf32>
    %277 = arith.mulf %272, %276 : vector<2x32xf32>
    %278 = tpu.concatenate %277, %259 in 1 : vector<2x32xf32>, vector<2x32xf32> -> vector<2x64xf32>
    %279 = arith.truncf %278 : vector<2x64xf32> to vector<2x64xbf16>
    %cst_34 = arith.constant dense<0.000000e+00> : vector<2x128xf32>
    %280 = tpu.matmul %279, %10, %cst_34 {dimension_numbers = #tpu.dot_dimension_numbers<[1], [0], [0], [1], [0, 0, 1, 1], [], []>} : vector<2x64xbf16>, vector<64x128xbf16>, vector<2x128xf32> -> vector<2x128xf32>
    %281 = vector.broadcast %3 : vector<1x128xf32> to vector<2x128xf32>
    %282 = arith.addf %280, %281 : vector<2x128xf32>
    %283 = arith.negf %282 : vector<2x128xf32>
    %284 = math.exp %283 : vector<2x128xf32>
    %cst_35 = arith.constant 1.000000e+00 : f32
    %285 = vector.broadcast %cst_35 : f32 to vector<2x128xf32>
    %286 = arith.addf %285, %284 : vector<2x128xf32>
    %287 = arith.divf %285, %286 : vector<2x128xf32>
    %288 = math.tanh %282 : vector<2x128xf32>
    %289 = vector.extract_strided_slice %287 {offsets = [0, 0], sizes = [2, 32], strides = [1, 1]} : vector<2x128xf32> to vector<2x32xf32>
    %290 = vector.extract_strided_slice %287 {offsets = [0, 32], sizes = [2, 32], strides = [1, 1]} : vector<2x128xf32> to vector<2x32xf32>
    %291 = vector.extract_strided_slice %288 {offsets = [0, 64], sizes = [2, 32], strides = [1, 1]} : vector<2x128xf32> to vector<2x32xf32>
    %292 = vector.extract_strided_slice %287 {offsets = [0, 96], sizes = [2, 32], strides = [1, 1]} : vector<2x128xf32> to vector<2x32xf32>
    %293 = arith.mulf %290, %257 : vector<2x32xf32>
    %294 = arith.mulf %289, %291 : vector<2x32xf32>
    %295 = arith.addf %293, %294 : vector<2x32xf32>
    %296 = math.tanh %295 : vector<2x32xf32>
    %297 = arith.mulf %292, %296 : vector<2x32xf32>
    %298 = arith.truncf %277 : vector<2x32xf32> to vector<2x32xbf16>
    %cst_36 = arith.constant dense<0.000000e+00> : vector<2x128xf32>
    %299 = tpu.matmul %298, %9, %cst_36 {dimension_numbers = #tpu.dot_dimension_numbers<[1], [0], [0], [1], [0, 0, 1, 1], [], []>} : vector<2x32xbf16>, vector<32x128xbf16>, vector<2x128xf32> -> vector<2x128xf32>
    %300 = arith.addf %59, %299 : vector<2x128xf32>
    %301 = arith.negf %300 : vector<2x128xf32>
    %302 = math.exp %301 : vector<2x128xf32>
    %cst_37 = arith.constant 1.000000e+00 : f32
    %303 = vector.broadcast %cst_37 : f32 to vector<2x128xf32>
    %304 = arith.addf %303, %302 : vector<2x128xf32>
    %305 = arith.divf %303, %304 : vector<2x128xf32>
    %306 = math.tanh %300 : vector<2x128xf32>
    %307 = vector.extract_strided_slice %305 {offsets = [0, 0], sizes = [2, 32], strides = [1, 1]} : vector<2x128xf32> to vector<2x32xf32>
    %308 = vector.extract_strided_slice %305 {offsets = [0, 32], sizes = [2, 32], strides = [1, 1]} : vector<2x128xf32> to vector<2x32xf32>
    %309 = vector.extract_strided_slice %306 {offsets = [0, 64], sizes = [2, 32], strides = [1, 1]} : vector<2x128xf32> to vector<2x32xf32>
    %310 = vector.extract_strided_slice %305 {offsets = [0, 96], sizes = [2, 32], strides = [1, 1]} : vector<2x128xf32> to vector<2x32xf32>
    %311 = arith.mulf %308, %275 : vector<2x32xf32>
    %312 = arith.mulf %307, %309 : vector<2x32xf32>
    %313 = arith.addf %311, %312 : vector<2x32xf32>
    %314 = math.tanh %313 : vector<2x32xf32>
    %315 = arith.mulf %310, %314 : vector<2x32xf32>
    %316 = tpu.concatenate %315, %297 in 1 : vector<2x32xf32>, vector<2x32xf32> -> vector<2x64xf32>
    %317 = arith.truncf %316 : vector<2x64xf32> to vector<2x64xbf16>
    %cst_38 = arith.constant dense<0.000000e+00> : vector<2x128xf32>
    %318 = tpu.matmul %317, %10, %cst_38 {dimension_numbers = #tpu.dot_dimension_numbers<[1], [0], [0], [1], [0, 0, 1, 1], [], []>} : vector<2x64xbf16>, vector<64x128xbf16>, vector<2x128xf32> -> vector<2x128xf32>
    %319 = vector.broadcast %3 : vector<1x128xf32> to vector<2x128xf32>
    %320 = arith.addf %318, %319 : vector<2x128xf32>
    %321 = arith.negf %320 : vector<2x128xf32>
    %322 = math.exp %321 : vector<2x128xf32>
    %cst_39 = arith.constant 1.000000e+00 : f32
    %323 = vector.broadcast %cst_39 : f32 to vector<2x128xf32>
    %324 = arith.addf %323, %322 : vector<2x128xf32>
    %325 = arith.divf %323, %324 : vector<2x128xf32>
    %326 = math.tanh %320 : vector<2x128xf32>
    %327 = vector.extract_strided_slice %325 {offsets = [0, 0], sizes = [2, 32], strides = [1, 1]} : vector<2x128xf32> to vector<2x32xf32>
    %328 = vector.extract_strided_slice %325 {offsets = [0, 32], sizes = [2, 32], strides = [1, 1]} : vector<2x128xf32> to vector<2x32xf32>
    %329 = vector.extract_strided_slice %326 {offsets = [0, 64], sizes = [2, 32], strides = [1, 1]} : vector<2x128xf32> to vector<2x32xf32>
    %330 = vector.extract_strided_slice %325 {offsets = [0, 96], sizes = [2, 32], strides = [1, 1]} : vector<2x128xf32> to vector<2x32xf32>
    %331 = arith.mulf %328, %295 : vector<2x32xf32>
    %332 = arith.mulf %327, %329 : vector<2x32xf32>
    %333 = arith.addf %331, %332 : vector<2x32xf32>
    %334 = math.tanh %333 : vector<2x32xf32>
    %335 = arith.mulf %330, %334 : vector<2x32xf32>
    %336 = arith.truncf %315 : vector<2x32xf32> to vector<2x32xbf16>
    %cst_40 = arith.constant dense<0.000000e+00> : vector<2x128xf32>
    %337 = tpu.matmul %336, %9, %cst_40 {dimension_numbers = #tpu.dot_dimension_numbers<[1], [0], [0], [1], [0, 0, 1, 1], [], []>} : vector<2x32xbf16>, vector<32x128xbf16>, vector<2x128xf32> -> vector<2x128xf32>
    %338 = arith.addf %65, %337 : vector<2x128xf32>
    %339 = arith.negf %338 : vector<2x128xf32>
    %340 = math.exp %339 : vector<2x128xf32>
    %cst_41 = arith.constant 1.000000e+00 : f32
    %341 = vector.broadcast %cst_41 : f32 to vector<2x128xf32>
    %342 = arith.addf %341, %340 : vector<2x128xf32>
    %343 = arith.divf %341, %342 : vector<2x128xf32>
    %344 = math.tanh %338 : vector<2x128xf32>
    %345 = vector.extract_strided_slice %343 {offsets = [0, 0], sizes = [2, 32], strides = [1, 1]} : vector<2x128xf32> to vector<2x32xf32>
    %346 = vector.extract_strided_slice %343 {offsets = [0, 32], sizes = [2, 32], strides = [1, 1]} : vector<2x128xf32> to vector<2x32xf32>
    %347 = vector.extract_strided_slice %344 {offsets = [0, 64], sizes = [2, 32], strides = [1, 1]} : vector<2x128xf32> to vector<2x32xf32>
    %348 = vector.extract_strided_slice %343 {offsets = [0, 96], sizes = [2, 32], strides = [1, 1]} : vector<2x128xf32> to vector<2x32xf32>
    %349 = arith.mulf %346, %313 : vector<2x32xf32>
    %350 = arith.mulf %345, %347 : vector<2x32xf32>
    %351 = arith.addf %349, %350 : vector<2x32xf32>
    %352 = math.tanh %351 : vector<2x32xf32>
    %353 = arith.mulf %348, %352 : vector<2x32xf32>
    %354 = tpu.concatenate %353, %335 in 1 : vector<2x32xf32>, vector<2x32xf32> -> vector<2x64xf32>
    %355 = arith.truncf %354 : vector<2x64xf32> to vector<2x64xbf16>
    %cst_42 = arith.constant dense<0.000000e+00> : vector<2x128xf32>
    %356 = tpu.matmul %355, %10, %cst_42 {dimension_numbers = #tpu.dot_dimension_numbers<[1], [0], [0], [1], [0, 0, 1, 1], [], []>} : vector<2x64xbf16>, vector<64x128xbf16>, vector<2x128xf32> -> vector<2x128xf32>
    %357 = vector.broadcast %3 : vector<1x128xf32> to vector<2x128xf32>
    %358 = arith.addf %356, %357 : vector<2x128xf32>
    %359 = arith.negf %358 : vector<2x128xf32>
    %360 = math.exp %359 : vector<2x128xf32>
    %cst_43 = arith.constant 1.000000e+00 : f32
    %361 = vector.broadcast %cst_43 : f32 to vector<2x128xf32>
    %362 = arith.addf %361, %360 : vector<2x128xf32>
    %363 = arith.divf %361, %362 : vector<2x128xf32>
    %364 = math.tanh %358 : vector<2x128xf32>
    %365 = vector.extract_strided_slice %363 {offsets = [0, 0], sizes = [2, 32], strides = [1, 1]} : vector<2x128xf32> to vector<2x32xf32>
    %366 = vector.extract_strided_slice %363 {offsets = [0, 32], sizes = [2, 32], strides = [1, 1]} : vector<2x128xf32> to vector<2x32xf32>
    %367 = vector.extract_strided_slice %364 {offsets = [0, 64], sizes = [2, 32], strides = [1, 1]} : vector<2x128xf32> to vector<2x32xf32>
    %368 = vector.extract_strided_slice %363 {offsets = [0, 96], sizes = [2, 32], strides = [1, 1]} : vector<2x128xf32> to vector<2x32xf32>
    %369 = arith.mulf %366, %333 : vector<2x32xf32>
    %370 = arith.mulf %365, %367 : vector<2x32xf32>
    %371 = arith.addf %369, %370 : vector<2x32xf32>
    %372 = math.tanh %371 : vector<2x32xf32>
    %373 = arith.mulf %368, %372 : vector<2x32xf32>
    %c0_44 = arith.constant 0 : index
    %c0_45 = arith.constant 0 : index
    %374 = vector.load %arg1[%c0_44, %c0_45] : memref<2x1xf32, #tpu.memory_space<vmem>>, vector<2x1xf32>
    %cst_46 = arith.constant 0.000000e+00 : f32
    %375 = vector.broadcast %cst_46 : f32 to vector<2x1xf32>
    %376 = arith.subf %374, %375 : vector<2x1xf32>
    %cst_47 = arith.constant 1.000000e+00 : f32
    %377 = vector.broadcast %cst_47 : f32 to vector<2x1xf32>
    %378 = arith.mulf %376, %377 : vector<2x1xf32>
    %379 = vector.broadcast %378 : vector<2x1xf32> to vector<2x32xf32>
    %380 = vector.broadcast %4 : vector<1x32xf32> to vector<2x32xf32>
    %381 = arith.mulf %379, %380 : vector<2x32xf32>
    %382 = vector.broadcast %5 : vector<1x32xf32> to vector<2x32xf32>
    %383 = arith.addf %381, %382 : vector<2x32xf32>
    %384 = tpu.concatenate %373, %383 in 1 : vector<2x32xf32>, vector<2x32xf32> -> vector<2x64xf32>
    %385 = arith.truncf %384 : vector<2x64xf32> to vector<2x64xbf16>
    %cst_48 = arith.constant dense<0.000000e+00> : vector<2x128xf32>
    %386 = tpu.matmul %385, %11, %cst_48 {dimension_numbers = #tpu.dot_dimension_numbers<[1], [0], [0], [1], [0, 0, 1, 1], [], []>} : vector<2x64xbf16>, vector<64x128xbf16>, vector<2x128xf32> -> vector<2x128xf32>
    %387 = vector.broadcast %6 : vector<1x128xf32> to vector<2x128xf32>
    %388 = arith.addf %386, %387 : vector<2x128xf32>
    %cst_49 = arith.constant 0.000000e+00 : f32
    %389 = vector.broadcast %cst_49 : f32 to vector<2x128xf32>
    %390 = arith.maximumf %388, %389 : vector<2x128xf32>
    %391 = arith.truncf %390 : vector<2x128xf32> to vector<2x128xbf16>
    %cst_50 = arith.constant dense<0.000000e+00> : vector<2x128xf32>
    %392 = tpu.matmul %391, %12, %cst_50 {dimension_numbers = #tpu.dot_dimension_numbers<[1], [0], [0], [1], [0, 0, 1, 1], [], []>} : vector<2x128xbf16>, vector<128x128xbf16>, vector<2x128xf32> -> vector<2x128xf32>
    %393 = vector.broadcast %7 : vector<1x128xf32> to vector<2x128xf32>
    %394 = arith.addf %392, %393 : vector<2x128xf32>
    %c0_51 = arith.constant 0 : index
    %c0_52 = arith.constant 0 : index
    %395 = vector.load %arg5[%c0_51, %c0_52] : memref<2x128xf32, #tpu.memory_space<vmem>>, vector<2x128xf32>
    tpu.vector_store %arg5[%c0_51, %c0_52], %394 {strides = array<i32>} : memref<2x128xf32, #tpu.memory_space<vmem>>, vector<2x128xf32>,
    return
  }
}

</mosaic_0001>

<bundles_post_ra>
// kernel: tpu_custom_call.1
= control target key start
LH: loop header
LB: loop body
LE: loop exit
PB: predicated region body
PF: predicated region fallthrough
CT: control target
= control target key end

     0   :  { %10 = vsyncpa [#allocation3], 0  ;;  %s2610_s0 = inlined_call_operand.vmem [shape: f32[2,8], index: 0, kind: input, shape index: {}]   ;;  %s2611_s1 = inlined_call_operand.vmem [shape: f32[2,1], index: 1, kind: input, shape index: {}]   ;;  %s2612_s2 = inlined_call_operand.hbm [shape: bf16[160,128], index: 2, kind: input, shape index: {}]   ;;  %s2613_s3 = inlined_call_operand.hbm [shape: bf16[128,128], index: 3, kind: input, shape index: {}]   ;;  %s2614_s4 = inlined_call_operand.vmem [shape: f32[8,128], index: 4, kind: input, shape index: {}]   ;;  %s2615_s5 = inlined_call_operand.hbm [shape: f32[2,128], index: 5, kind: output, shape index: {}]  }
   0x1   :  { %11 = vsyncpa [#allocation6], 0 }
   0x2   :  { %12 = vsyncpa [#allocation4], 0  ;;  %s2155_s18 = smov [#allocation2]   ;;  %s2083_s22 = scalar_lea.hbm %s2612_s2, 1280 }
   0x3   :  { %s22_s19 = sshll.u32 %s2155_s18, 4  ;;  %p2084_p0 = scmp.ne.s32.totalorder %s2612_s2, %s2083_s22  ;;  %s23_s19 = int_to_ptr.vmem [resolvable:$true] %s22_s19 }
   0x4   :  { %p2087_p1 = scmp.lt.u32.totalorder %s2083_s22, %s2612_s2 }
   0x6   :  { %p2089_p2 = pnand %p2087_p1, %p2084_p0 }
   0x8   :  { %2092 = shalt.err (!%p2089_p2)
}
   0x9   :  { %s2093_s27 = scalar_lea.vmem %s23_s19, 1280  ;;  %p2098_p4 = scmp.lt.s32.totalorder %s23_s19, %s23_s19 }
   0xa   :  { %p2094_p3 = scmp.ne.s32.totalorder %s23_s19, %s2093_s27  ;;  %p2099_p5 = scmp.lt.s32.totalorder %s2093_s27, %s2093_s27 }
   0xc   :  { %p2100_p6 = por %p2099_p5, %p2098_p4 }
   0xe   :  { %p2101_p7 = pnand %p2100_p6, %p2094_p3 }
  0x10   :  { %2104 = shalt.err (!%p2101_p7)
}
  0x11   :  { %s2156_s28 = smov 64   ;;  %s2157_s29 = smov 4  }
  0x12   :  { %28 = dma.hbm_to_vmem [thread:$0]  %s2612_s2, 1280, %s23_s19, [#allocation3], %s2156_s28, %s2156_s28, %s2157_s29  }
  0x13   :  { %s2158_s7 = smov [#allocation5]   ;;  %s2105_s11 = scalar_lea.hbm %s2613_s3, 1024 }
  0x14   :  { %s34_s8 = sshll.u32 %s2158_s7, 4  ;;  %p2106_p8 = scmp.ne.s32.totalorder %s2613_s3, %s2105_s11  ;;  %s35_s8 = int_to_ptr.vmem [resolvable:$true] %s34_s8 }
  0x15   :  { %p2109_p9 = scmp.lt.u32.totalorder %s2105_s11, %s2613_s3 }
  0x17   :  { %p2111_p10 = pnand %p2109_p9, %p2106_p8 }
  0x19   :  { %2114 = shalt.err (!%p2111_p10)
}
  0x1a   :  { %s2115_s16 = scalar_lea.vmem %s35_s8, 1024  ;;  %p2120_p12 = scmp.lt.s32.totalorder %s35_s8, %s35_s8 }
  0x1b   :  { %p2116_p11 = scmp.ne.s32.totalorder %s35_s8, %s2115_s16  ;;  %p2121_p13 = scmp.lt.s32.totalorder %s2115_s16, %s2115_s16 }
  0x1d   :  { %p2122_p0 = por %p2121_p13, %p2120_p12 }
  0x1f   :  { %p2123_p1 = pnand %p2122_p0, %p2116_p11 }
  0x21   :  { %2126 = shalt.err (!%p2123_p1)
}
  0x22   :  { %40 = dma.hbm_to_vmem [thread:$0]  %s2613_s3, 1024, %s35_s8, [#allocation6], %s2156_s28, %s2156_s28, %s2157_s29  }
  0x23   :  { %2149 = dma.done.wait [#allocation3], 1280  }
  0x24   :  { %2150 = vsyncadd [#allocation3], 4294966016 }
  0x25   :  { %2151 = dma.done.wait [#allocation6], 1024  }
  0x26   :  { %2152 = vsyncadd [#allocation6], 4294966272  ;;  %v2159_v0 = vmov 0.0   ;;  %vm2160_vm0 = vmmov 0   ;;  %v2161_v1 = vmov 0   ;;  %v2236_v2 = vld [vmem:[#allocation2] sm:$0xff]   ;;  %v93_v5 = vlaneseq }
  0x27   :  { %1707 = vmatprep.subr.bf16.mxu0 %v2159_v0  ;;  %1711 = vmatprep.mubr.msk.bf16.mxu0 %vm2160_vm0, %v2159_v0  ;;  %v2239_v3 = vld [vmem:[#allocation2 + $0x8] sm:$0xff]   ;;  %v2244_v4 = vld [vmem:[%s2610_s0] sm:$0x3]  ;;  %s2162_s21 = smov 32   ;;  %v2279_v30 = vld [vmem:[#allocation2 + $0x10] sm:$0xff]   ;;  %v2163_v35 = vmov 1  }
  0x28   :  { %1915 = vset.pattern.permute.xlu0 %v2161_v1  ;;  %1715 = vmatprep.subr.bf16.mxu1 %v2159_v0  ;;  %v2257_v6 = vshrl.u32 %v93_v5, 7  ;;  %v2263_v8 = vld [vmem:[%s2614_s4] sm:$0xff]  ;;  %v2282_v31 = vld [vmem:[#allocation2 + $0x18] sm:$0xff]   ;;  %v2292_v34 = vld [vmem:[#allocation2 + $0x28] sm:$0xff]   ;;  %vm157_vm1 = vcmask 261120   ;;  %vm260_vm2 = vcmask 523264  }
  0x29   :  { %1723 = vmatprep.mubr.msk.bf16.mxu1 %vm2160_vm0, %v2159_v0  ;;  %1708 = vmatpush3.bf16.msra.mxu0 %v2236_v2  ;;  %v2286_v32 = vld [vmem:[#allocation2 + $0x20] sm:$0xff]  }
  0x2a   :  { %1709 = vmatprep.subr.bf16.mxu0 %v2159_v0  ;;  %90 = vperm.xlu0 %1915, %v2244_v4   ;;  %v95_v7 = vsub.s32 0, %v2257_v6  ;;  %v100_v10 = vsub.s32 1, %v2257_v6  ;;  %v234_v44 = vsub.s32 2, %v2257_v6 }
  0x2b   :  { %1716 = vmatpush3.bf16.msra.mxu1 %v2279_v30 }
  0x2c   :  { %v2266_v9 = vrot.slane %v2263_v8, %v95_v7  ;;  %v2271_v13 = vrot.slane %v2263_v8, %v100_v10  ;;  %1717 = vmatprep.subr.bf16.mxu1 %v2159_v0  ;;  %v2322_v46 = vrot.slane %v2263_v8, %v234_v44 }
  0x2d   :  { %1710 = vmatpush3.bf16.msra.mxu0 %v2239_v3 }
  0x2e   :  { %1727 = vmatprep.subr.bf16.mxu0 %v2159_v0  ;;  %1916 = vset.pattern.permute.xlu0 %v2163_v35 }
  0x2f   :  { %1718 = vmatpush3.bf16.msra.mxu1 %v2282_v31 }
  0x30   :  { %1712 = vmatmul.mubr.bf16.vlgmr.msra.gmra.mrb[0].mxu0 %v2161_v1  ;;  %1719 = vmatprep.subr.bf16.mxu1 %v2159_v0 }
  0x31   :  { %1728 = vmatpush3.bf16.msra.mxu0 %v2236_v2  ;;  %1731 = vmatprep.mubr.msk.bf16.mxu0 %vm2160_vm0, %v2159_v0 }
  0x32   :  { %1729 = vmatprep.subr.bf16.mxu0 %v2159_v0 }
  0x33   :  { %1720 = vmatpush3.bf16.msra.mxu1 %v2286_v32 }
  0x34   :  { %1721 = vmatprep.subr.bf16.mxu1 %v2159_v0 }
  0x35   :  { %1730 = vmatpush3.bf16.msra.mxu0 %v2239_v3 }
  0x36   :  { %1767 = vmatprep.subr.bf16.mxu0 %v2159_v0 }
  0x37   :  { %1722 = vmatpush3.bf16.msra.mxu1 %v2292_v34 }
  0x38   :  { %1735 = vmatprep.subr.bf16.mxu1 %v2159_v0 }
  0xa9   :  { %v91_v11 = vpop.permute.xlu0 %90 }
  0xaa   :  { %v97_v12 = vmul.f32 %v2266_v9, %v91_v11 }
  0xac   :  { %v102_v14 = vadd.f32 %v2271_v13, %v97_v12 }
 0x103   :  { %v195_v15 = vpop.f32.mrb[0].mxu0 }
 0x104   :  { %v201_v16 = vadd.f32 %v195_v15, %v102_v14  ;;  %v1713_v17 = vpop.f32.mrb[1].mxu0 }
 0x105   :  { %v198_v18 = vpop.f32.mrb[2].mxu0 }
 0x106   :  { %1947 = vtanh.f32 %v201_v16  ;;  %v1714_v19 = vpop.f32.mrb[3].mxu0  ;;  %v1581_v21 = vmul.f32 -1.442695, %v201_v16 }
 0x108   :  { %1949 = vpow2.f32 %v1581_v21 }
 0x110   :  { %v1948_v20 = vpop.eup %1947 }
 0x111   :  { %211 = vrot.lane.b32.xlu0 %v1948_v20, %s2156_s28 }
 0x112   :  { %v1950_v22 = vpop.eup %1949 }
 0x113   :  { %v205_v23 = vadd.f32 1.0, %v1950_v22 }
 0x115   :  { %1951 = vrcp.f32 %v205_v23 }
 0x11f   :  { %v1952_v24 = vpop.eup %1951 }
 0x120   :  { %v209_v27 = vmul.f32 0.0, %v1952_v24 }
 0x183   :  { %v212_v25 = vpop.permute.xlu0 %211 }
 0x184   :  { %v214_v26 = vmul.f32 %v1952_v24, %v212_v25 }
 0x186   :  { %216 = vrot.lane.b32.xlu1 %v214_v26, %s2162_s21 }
 0x1f8   :  { %v217_v28 = vpop.permute.xlu1 %216 }
 0x1f9   :  { %v2276_v29 = vadd.f32 %v217_v28, %v209_v27  ;;  %v2164_v27 = vmov 2  }
 0x1fa   :  { %1917 = vset.pattern.permute.xlu1 %v2164_v27 }
 0x1fb   :  { %1953 = vtanh.f32 %v2276_v29 }
 0x205   :  { %v1954_v33 = vpop.eup %1953 }
 0x206   :  { %222 = vrot.lane.b32.xlu1 %v1954_v33, %s2156_s28 }
 0x278   :  { %v223_v36 = vpop.permute.xlu1 %222 }
 0x279   :  { %v225_v37 = vmul.f32 %v1952_v24, %v223_v36 }
 0x27b   :  { %v328_v38 = vpack.c.bf16 %v225_v37, %v225_v37  ;;  %227 = vrot.lane.b32.xlu0 %v225_v37, %s2162_s21 }
 0x27d   :  { %330 = vrot.lane.b32.xlu1 %v328_v38, %s2162_s21 }
 0x27f   :  { %104 = vperm.xlu0 %1916, %v2244_v4  }
 0x283   :  { %1923 = vset.pattern.permute.xlu0 %v2161_v1 }
 0x2ed   :  { %v228_v39 = vpop.permute.xlu0 %227 }
 0x2ee   :  { %v230_v40 = vsel %vm157_vm1, %v228_v39, 0.0 }
 0x2ef   :  { %v231_v41 = vpack.c.bf16 %v230_v40, %v230_v40  ;;  %v331_v42 = vpop.permute.xlu1 %330 }
 0x2f0   :  { %1732 = vmatmul.mubr.msk.bf16.vlgmr.msra.gmra.mrb[4].mxu0 %vm157_vm1, %v331_v42 }
 0x2f1   :  { %1724 = vmatmul.mubr.msk.bf16.vlgmr.msra.gmra.mrb[0].mxu1 %vm260_vm2, %v231_v41  ;;  %1768 = vmatpush3.bf16.msra.mxu0 %v2236_v2 }
 0x2f2   :  { %1736 = vmatpush3.bf16.msra.mxu1 %v2279_v30  ;;  %1743 = vmatprep.mubr.msk.bf16.mxu1 %vm2160_vm0, %v2159_v0 }
 0x2f3   :  { %1737 = vmatprep.subr.bf16.mxu1 %v2159_v0  ;;  %1769 = vmatprep.subr.bf16.mxu0 %v2159_v0 }
 0x2f4   :  { %1771 = vmatprep.mubr.msk.bf16.mxu0 %vm2160_vm0, %v2159_v0 }
 0x2f5   :  { %1770 = vmatpush3.bf16.msra.mxu0 %v2239_v3 }
 0x2f6   :  { %1738 = vmatpush3.bf16.msra.mxu1 %v2282_v31  ;;  %1775 = vmatprep.subr.bf16.mxu0 %v2159_v0 }
 0x2f7   :  { %1739 = vmatprep.subr.bf16.mxu1 %v2159_v0 }
 0x2fa   :  { %1740 = vmatpush3.bf16.msra.mxu1 %v2286_v32 }
 0x2fb   :  { %1741 = vmatprep.subr.bf16.mxu1 %v2159_v0 }
 0x2fe   :  { %1742 = vmatpush3.bf16.msra.mxu1 %v2292_v34  ;;  %v105_v43 = vpop.permute.xlu0 %104 }
 0x2ff   :  { %1747 = vmatprep.subr.bf16.mxu1 %v2159_v0  ;;  %v107_v45 = vmul.f32 %v105_v43, %v2266_v9 }
 0x301   :  { %v108_v47 = vadd.f32 %v107_v45, %v2271_v13 }
 0x3c3   :  { %v369_v48 = vpop.f32.mrb[4].mxu0 }
 0x3c4   :  { %v298_v49 = vpop.f32.mrb[0].mxu1  ;;  %v1733_v50 = vpop.f32.mrb[5].mxu0  ;;  %v375_v56 = vadd.f32 %v369_v48, %v108_v47 }
 0x3c5   :  { %v299_v51 = vadd.f32 %v298_v49, %v2322_v46  ;;  %v1725_v52 = vpop.f32.mrb[1].mxu1  ;;  %v372_v53 = vpop.f32.mrb[6].mxu0 }
 0x3c6   :  { %v301_v54 = vpop.f32.mrb[2].mxu1  ;;  %v1734_v55 = vpop.f32.mrb[7].mxu0  ;;  %v1589_v61 = vmul.f32 -1.442695, %v375_v56 }
 0x3c7   :  { %1955 = vtanh.f32 %v299_v51  ;;  %v1726_v57 = vpop.f32.mrb[3].mxu1  ;;  %v1587_v60 = vmul.f32 -1.442695, %v299_v51 }
 0x3c8   :  { %1957 = vtanh.f32 %v375_v56 }
 0x3c9   :  { %1959 = vpow2.f32 %v1587_v60 }
 0x3ca   :  { %1961 = vpow2.f32 %v1589_v61 }
 0x3d1   :  { %v1956_v58 = vpop.eup %1955 }
 0x3d2   :  { %313 = vrot.lane.b32.xlu1 %v1956_v58, %s2156_s28  ;;  %v1958_v59 = vpop.eup %1957 }
 0x3d3   :  { %v1960_v62 = vpop.eup %1959 }
 0x3d4   :  { %v307_v63 = vadd.f32 1.0, %v1960_v62  ;;  %v1962_v1 = vpop.eup %1961 }
 0x3d5   :  { %v379_v5 = vadd.f32 1.0, %v1962_v1 }
 0x3d6   :  { %385 = vrot.lane.b32.xlu1 %v1958_v59, %s2156_s28  ;;  %1963 = vrcp.f32 %v307_v63 }
 0x3d7   :  { %1965 = vrcp.f32 %v379_v5 }
 0x3e0   :  { %v1964_v7 = vpop.eup %1963 }
 0x3e1   :  { %v1966_v11 = vpop.eup %1965  ;;  %v311_v15 = vmul.f32 0.0, %v1964_v7 }
 0x3e2   :  { %v383_v18 = vmul.f32 %v1966_v11, %v2276_v29 }
 0x444   :  { %v314_v8 = vpop.permute.xlu1 %313 }
 0x445   :  { %v316_v10 = vmul.f32 %v1964_v7, %v314_v8 }
 0x447   :  { %318 = vrot.lane.b32.xlu0 %v316_v10, %s2162_s21 }
 0x448   :  { %v386_v12 = vpop.permute.xlu1 %385 }
 0x449   :  { %v388_v14 = vmul.f32 %v1966_v11, %v386_v12 }
 0x44b   :  { %390 = vrot.lane.b32.xlu1 %v388_v14, %s2162_s21 }
 0x4b9   :  { %v319_v16 = vpop.permute.xlu0 %318 }
 0x4ba   :  { %v2330_v17 = vadd.f32 %v319_v16, %v311_v15 }
 0x4bc   :  { %1967 = vtanh.f32 %v2330_v17 }
 0x4bd   :  { %v391_v19 = vpop.permute.xlu1 %390 }
 0x4be   :  { %v2334_v20 = vadd.f32 %v391_v19, %v383_v18  ;;  %v2165_v19 = vmov 3  }
 0x4c0   :  { %1969 = vtanh.f32 %v2334_v20 }
 0x4c6   :  { %v1968_v21 = vpop.eup %1967 }
 0x4c7   :  { %324 = vrot.lane.b32.xlu0 %v1968_v21, %s2156_s28 }
 0x4ca   :  { %v1970_v22 = vpop.eup %1969 }
 0x4cb   :  { %396 = vrot.lane.b32.xlu1 %v1970_v22, %s2156_s28 }
 0x539   :  { %v325_v23 = vpop.permute.xlu0 %324 }
 0x53a   :  { %v327_v24 = vmul.f32 %v1964_v7, %v325_v23 }
 0x53c   :  { %405 = vrot.lane.b32.xlu1 %v327_v24, %s2156_s28 }
 0x53d   :  { %v397_v25 = vpop.permute.xlu1 %396 }
 0x53e   :  { %v399_v26 = vmul.f32 %v1966_v11, %v397_v25 }
 0x540   :  { %401 = vrot.lane.b32.xlu0 %v399_v26, %s2162_s21  ;;  %110 = vperm.xlu1 %1917, %v2244_v4   ;;  %v477_v28 = vpack.c.bf16 %v399_v26, %v399_v26 }
 0x544   :  { %479 = vrot.lane.b32.xlu0 %v477_v28, %s2162_s21  ;;  %1918 = vset.pattern.permute.xlu1 %v2165_v19 }
 0x5ae   :  { %v406_v29 = vpop.permute.xlu1 %405 }
 0x5b2   :  { %v402_v33 = vpop.permute.xlu0 %401 }
 0x5b3   :  { %v408_v35 = vsel %vm157_vm1, %v402_v33, %v406_v29 }
 0x5b4   :  { %v409_v36 = vpack.c.bf16 %v408_v35, %v408_v35 }
 0x5b6   :  { %1744 = vmatmul.mubr.msk.bf16.vlgmr.msra.gmra.mrb[4].mxu1 %vm260_vm2, %v409_v36  ;;  %v480_v37 = vpop.permute.xlu0 %479 }
 0x5b7   :  { %1748 = vmatpush3.bf16.msra.mxu1 %v2236_v2  ;;  %1751 = vmatprep.mubr.msk.bf16.mxu1 %vm2160_vm0, %v2159_v0 }
 0x5b8   :  { %1749 = vmatprep.subr.bf16.mxu1 %v2159_v0 }
 0x5bb   :  { %1750 = vmatpush3.bf16.msra.mxu1 %v2239_v3 }
 0x5bc   :  { %1755 = vmatprep.subr.bf16.mxu1 %v2159_v0 }
 0x5be   :  { %1752 = vmatmul.mubr.msk.bf16.vlgmr.msra.gmra.mrb[8].mxu1 %vm157_vm1, %v480_v37 }
 0x5bf   :  { %1756 = vmatpush3.bf16.msra.mxu1 %v2279_v30  ;;  %1763 = vmatprep.mubr.msk.bf16.mxu1 %vm2160_vm0, %v2159_v0  ;;  %v111_v38 = vpop.permute.xlu1 %110 }
 0x5c0   :  { %1757 = vmatprep.subr.bf16.mxu1 %v2159_v0  ;;  %v113_v42 = vmul.f32 %v111_v38, %v2266_v9 }
 0x5c2   :  { %v114_v45 = vadd.f32 %v113_v42, %v2271_v13 }
 0x5c3   :  { %1758 = vmatpush3.bf16.msra.mxu1 %v2282_v31 }
 0x5c4   :  { %1759 = vmatprep.subr.bf16.mxu1 %v2159_v0 }
 0x5c7   :  { %1760 = vmatpush3.bf16.msra.mxu1 %v2286_v32 }
 0x5c8   :  { %1761 = vmatprep.subr.bf16.mxu1 %v2159_v0 }
 0x5cb   :  { %1762 = vmatpush3.bf16.msra.mxu1 %v2292_v34 }
 0x5cc   :  { %1787 = vmatprep.subr.bf16.mxu1 %v2159_v0 }
 0x689   :  { %v447_v39 = vpop.f32.mrb[4].mxu1 }
 0x68a   :  { %v448_v40 = vadd.f32 %v447_v39, %v2322_v46  ;;  %v1745_v41 = vpop.f32.mrb[5].mxu1 }
 0x68b   :  { %v450_v43 = vpop.f32.mrb[6].mxu1 }
 0x68c   :  { %1971 = vtanh.f32 %v448_v40  ;;  %v1746_v44 = vpop.f32.mrb[7].mxu1  ;;  %v1591_v54 = vmul.f32 -1.442695, %v448_v40 }
 0x691   :  { %v518_v47 = vpop.f32.mrb[8].mxu1 }
 0x692   :  { %v524_v48 = vadd.f32 %v518_v47, %v114_v45  ;;  %v1753_v49 = vpop.f32.mrb[9].mxu1 }
 0x693   :  { %v521_v50 = vpop.f32.mrb[10].mxu1 }
 0x694   :  { %1973 = vtanh.f32 %v524_v48  ;;  %v1754_v51 = vpop.f32.mrb[11].mxu1  ;;  %v1593_v55 = vmul.f32 -1.442695, %v524_v48 }
 0x695   :  { %1975 = vpow2.f32 %v1591_v54 }
 0x696   :  { %v1972_v52 = vpop.eup %1971  ;;  %1977 = vpow2.f32 %v1593_v55 }
 0x697   :  { %462 = vrot.lane.b32.xlu0 %v1972_v52, %s2156_s28 }
 0x69e   :  { %v1974_v53 = vpop.eup %1973 }
 0x69f   :  { %534 = vrot.lane.b32.xlu1 %v1974_v53, %s2156_s28  ;;  %v1976_v56 = vpop.eup %1975 }
 0x6a0   :  { %v456_v57 = vadd.f32 1.0, %v1976_v56  ;;  %v1978_v58 = vpop.eup %1977 }
 0x6a1   :  { %v528_v59 = vadd.f32 1.0, %v1978_v58 }
 0x6a2   :  { %1979 = vrcp.f32 %v456_v57 }
 0x6a3   :  { %1981 = vrcp.f32 %v528_v59 }
 0x6ac   :  { %v1980_v60 = vpop.eup %1979 }
 0x6ad   :  { %v1982_v63 = vpop.eup %1981  ;;  %v460_v7 = vmul.f32 %v1980_v60, %v2330_v17 }
 0x6ae   :  { %v532_v11 = vmul.f32 %v1982_v63, %v2334_v20 }
 0x709   :  { %v463_v61 = vpop.permute.xlu0 %462 }
 0x70a   :  { %v465_v62 = vmul.f32 %v1980_v60, %v463_v61 }
 0x70c   :  { %467 = vrot.lane.b32.xlu0 %v465_v62, %s2162_s21 }
 0x711   :  { %v535_v1 = vpop.permute.xlu1 %534 }
 0x712   :  { %v537_v5 = vmul.f32 %v1982_v63, %v535_v1 }
 0x714   :  { %539 = vrot.lane.b32.xlu1 %v537_v5, %s2162_s21 }
 0x77e   :  { %v468_v8 = vpop.permute.xlu0 %467 }
 0x77f   :  { %v2370_v10 = vadd.f32 %v468_v8, %v460_v7 }
 0x781   :  { %1983 = vtanh.f32 %v2370_v10 }
 0x786   :  { %v540_v12 = vpop.permute.xlu1 %539 }
 0x787   :  { %v2374_v14 = vadd.f32 %v540_v12, %v532_v11  ;;  %v2166_v11 = vmov 4  }
 0x789   :  { %1985 = vtanh.f32 %v2374_v14 }
 0x78b   :  { %v1984_v15 = vpop.eup %1983 }
 0x78c   :  { %473 = vrot.lane.b32.xlu0 %v1984_v15, %s2156_s28 }
 0x793   :  { %v1986_v16 = vpop.eup %1985 }
 0x794   :  { %545 = vrot.lane.b32.xlu1 %v1986_v16, %s2156_s28 }
 0x7fe   :  { %v474_v18 = vpop.permute.xlu0 %473 }
 0x7ff   :  { %v476_v17 = vmul.f32 %v1980_v60, %v474_v18 }
 0x801   :  { %554 = vrot.lane.b32.xlu1 %v476_v17, %s2156_s28 }
 0x805   :  { %116 = vperm.xlu1 %1918, %v2244_v4  }
 0x806   :  { %v546_v20 = vpop.permute.xlu1 %545 }
 0x807   :  { %v548_v21 = vmul.f32 %v1982_v63, %v546_v20 }
 0x809   :  { %550 = vrot.lane.b32.xlu0 %v548_v21, %s2162_s21  ;;  %v626_v22 = vpack.c.bf16 %v548_v21, %v548_v21  ;;  %1919 = vset.pattern.permute.xlu1 %v2166_v11 }
 0x80d   :  { %628 = vrot.lane.b32.xlu0 %v626_v22, %s2162_s21 }
 0x873   :  { %v555_v23 = vpop.permute.xlu1 %554 }
 0x87b   :  { %v551_v24 = vpop.permute.xlu0 %550 }
 0x87c   :  { %v557_v25 = vsel %vm157_vm1, %v551_v24, %v555_v23 }
 0x87d   :  { %v558_v26 = vpack.c.bf16 %v557_v25, %v557_v25 }
 0x87f   :  { %v629_v27 = vpop.permute.xlu0 %628  ;;  %1764 = vmatmul.mubr.msk.bf16.vlgmr.msra.gmra.mrb[12].mxu1 %vm260_vm2, %v558_v26 }
 0x880   :  { %1772 = vmatmul.mubr.msk.bf16.vlgmr.msra.gmra.mrb[8].mxu0 %vm157_vm1, %v629_v27  ;;  %1788 = vmatpush3.bf16.msra.mxu1 %v2236_v2 }
 0x881   :  { %1776 = vmatpush3.bf16.msra.mxu0 %v2279_v30  ;;  %1789 = vmatprep.subr.bf16.mxu1 %v2159_v0 }
 0x882   :  { %1777 = vmatprep.subr.bf16.mxu0 %v2159_v0  ;;  %1783 = vmatprep.mubr.msk.bf16.mxu0 %vm2160_vm0, %v2159_v0 }
 0x883   :  { %1791 = vmatprep.mubr.msk.bf16.mxu1 %vm2160_vm0, %v2159_v0 }
 0x884   :  { %1790 = vmatpush3.bf16.msra.mxu1 %v2239_v3  ;;  %v117_v28 = vpop.permute.xlu1 %116 }
 0x885   :  { %1778 = vmatpush3.bf16.msra.mxu0 %v2282_v31  ;;  %1795 = vmatprep.subr.bf16.mxu1 %v2159_v0  ;;  %v119_v29 = vmul.f32 %v117_v28, %v2266_v9 }
 0x886   :  { %1779 = vmatprep.subr.bf16.mxu0 %v2159_v0 }
 0x887   :  { %v120_v33 = vadd.f32 %v119_v29, %v2271_v13 }
 0x889   :  { %1780 = vmatpush3.bf16.msra.mxu0 %v2286_v32 }
 0x88a   :  { %1781 = vmatprep.subr.bf16.mxu0 %v2159_v0 }
 0x88d   :  { %1782 = vmatpush3.bf16.msra.mxu0 %v2292_v34 }
 0x88e   :  { %1807 = vmatprep.subr.bf16.mxu0 %v2159_v0 }
 0x952   :  { %v596_v35 = vpop.f32.mrb[12].mxu1 }
 0x953   :  { %v597_v36 = vadd.f32 %v596_v35, %v2322_v46  ;;  %v1765_v37 = vpop.f32.mrb[13].mxu1  ;;  %v667_v38 = vpop.f32.mrb[8].mxu0 }
 0x954   :  { %v673_v39 = vadd.f32 %v667_v38, %v120_v33  ;;  %v599_v40 = vpop.f32.mrb[14].mxu1  ;;  %v1773_v41 = vpop.f32.mrb[9].mxu0 }
 0x955   :  { %1987 = vtanh.f32 %v597_v36  ;;  %v1766_v42 = vpop.f32.mrb[15].mxu1  ;;  %v670_v43 = vpop.f32.mrb[10].mxu0  ;;  %v1595_v48 = vmul.f32 -1.442695, %v597_v36 }
 0x956   :  { %1989 = vtanh.f32 %v673_v39  ;;  %v1774_v44 = vpop.f32.mrb[11].mxu0  ;;  %v1597_v49 = vmul.f32 -1.442695, %v673_v39 }
 0x957   :  { %1991 = vpow2.f32 %v1595_v48 }
 0x958   :  { %1993 = vpow2.f32 %v1597_v49 }
 0x95f   :  { %v1988_v45 = vpop.eup %1987 }
 0x960   :  { %v1990_v47 = vpop.eup %1989  ;;  %611 = vrot.lane.b32.xlu0 %v1988_v45, %s2156_s28 }
 0x961   :  { %683 = vrot.lane.b32.xlu1 %v1990_v47, %s2156_s28  ;;  %v1992_v50 = vpop.eup %1991 }
 0x962   :  { %v1994_v51 = vpop.eup %1993  ;;  %v605_v52 = vadd.f32 1.0, %v1992_v50 }
 0x963   :  { %v677_v53 = vadd.f32 1.0, %v1994_v51 }
 0x964   :  { %1995 = vrcp.f32 %v605_v52 }
 0x965   :  { %1997 = vrcp.f32 %v677_v53 }
 0x96e   :  { %v1996_v54 = vpop.eup %1995 }
 0x96f   :  { %v1998_v56 = vpop.eup %1997  ;;  %v609_v60 = vmul.f32 %v1996_v54, %v2370_v10 }
 0x970   :  { %v681_v62 = vmul.f32 %v1998_v56, %v2374_v14 }
 0x9d2   :  { %v612_v55 = vpop.permute.xlu0 %611 }
 0x9d3   :  { %v614_v57 = vmul.f32 %v1996_v54, %v612_v55  ;;  %v684_v58 = vpop.permute.xlu1 %683 }
 0x9d4   :  { %v686_v59 = vmul.f32 %v1998_v56, %v684_v58 }
 0x9d5   :  { %616 = vrot.lane.b32.xlu0 %v614_v57, %s2162_s21 }
 0x9d6   :  { %688 = vrot.lane.b32.xlu1 %v686_v59, %s2162_s21 }
 0xa47   :  { %v617_v61 = vpop.permute.xlu0 %616 }
 0xa48   :  { %v2411_v63 = vadd.f32 %v617_v61, %v609_v60  ;;  %v689_v1 = vpop.permute.xlu1 %688 }
 0xa49   :  { %v2413_v5 = vadd.f32 %v689_v1, %v681_v62  ;;  %v2167_v62 = vmov 5  }
 0xa4a   :  { %1999 = vtanh.f32 %v2411_v63 }
 0xa4b   :  { %2001 = vtanh.f32 %v2413_v5 }
 0xa54   :  { %v2000_v7 = vpop.eup %1999 }
 0xa55   :  { %v2002_v8 = vpop.eup %2001  ;;  %622 = vrot.lane.b32.xlu0 %v2000_v7, %s2156_s28 }
 0xa56   :  { %694 = vrot.lane.b32.xlu1 %v2002_v8, %s2156_s28 }
 0xac7   :  { %v623_v10 = vpop.permute.xlu0 %622 }
 0xac8   :  { %v625_v12 = vmul.f32 %v1996_v54, %v623_v10  ;;  %v695_v14 = vpop.permute.xlu1 %694 }
 0xac9   :  { %v697_v15 = vmul.f32 %v1998_v56, %v695_v14 }
 0xaca   :  { %703 = vrot.lane.b32.xlu1 %v625_v12, %s2156_s28 }
 0xacb   :  { %699 = vrot.lane.b32.xlu0 %v697_v15, %s2162_s21  ;;  %v775_v16 = vpack.c.bf16 %v697_v15, %v697_v15 }
 0xace   :  { %122 = vperm.xlu1 %1919, %v2244_v4  }
 0xacf   :  { %777 = vrot.lane.b32.xlu0 %v775_v16, %s2162_s21 }
 0xad2   :  { %1920 = vset.pattern.permute.xlu1 %v2167_v62 }
 0xb3c   :  { %v704_v18 = vpop.permute.xlu1 %703 }
 0xb3d   :  { %v700_v17 = vpop.permute.xlu0 %699 }
 0xb3e   :  { %v706_v19 = vsel %vm157_vm1, %v700_v17, %v704_v18 }
 0xb3f   :  { %v707_v20 = vpack.c.bf16 %v706_v19, %v706_v19 }
 0xb41   :  { %v778_v21 = vpop.permute.xlu0 %777  ;;  %1784 = vmatmul.mubr.msk.bf16.vlgmr.msra.gmra.mrb[12].mxu0 %vm260_vm2, %v707_v20 }
 0xb42   :  { %1792 = vmatmul.mubr.msk.bf16.vlgmr.msra.gmra.mrb[16].mxu1 %vm157_vm1, %v778_v21  ;;  %1808 = vmatpush3.bf16.msra.mxu0 %v2236_v2 }
 0xb43   :  { %1796 = vmatpush3.bf16.msra.mxu1 %v2279_v30  ;;  %1809 = vmatprep.subr.bf16.mxu0 %v2159_v0 }
 0xb44   :  { %1797 = vmatprep.subr.bf16.mxu1 %v2159_v0  ;;  %1803 = vmatprep.mubr.msk.bf16.mxu1 %vm2160_vm0, %v2159_v0 }
 0xb45   :  { %1811 = vmatprep.mubr.msk.bf16.mxu0 %vm2160_vm0, %v2159_v0 }
 0xb46   :  { %1810 = vmatpush3.bf16.msra.mxu0 %v2239_v3 }
 0xb47   :  { %1798 = vmatpush3.bf16.msra.mxu1 %v2282_v31  ;;  %1815 = vmatprep.subr.bf16.mxu0 %v2159_v0 }
 0xb48   :  { %1799 = vmatprep.subr.bf16.mxu1 %v2159_v0 }
 0xb4b   :  { %1800 = vmatpush3.bf16.msra.mxu1 %v2286_v32 }
 0xb4c   :  { %1801 = vmatprep.subr.bf16.mxu1 %v2159_v0 }
 0xb4d   :  { %v123_v22 = vpop.permute.xlu1 %122 }
 0xb4e   :  { %v125_v23 = vmul.f32 %v123_v22, %v2266_v9 }
 0xb4f   :  { %1802 = vmatpush3.bf16.msra.mxu1 %v2292_v34 }
 0xb50   :  { %1827 = vmatprep.subr.bf16.mxu1 %v2159_v0  ;;  %v126_v24 = vadd.f32 %v125_v23, %v2271_v13 }
 0xc14   :  { %v745_v25 = vpop.f32.mrb[12].mxu0 }
 0xc15   :  { %v746_v26 = vadd.f32 %v745_v25, %v2322_v46  ;;  %v1785_v27 = vpop.f32.mrb[13].mxu0  ;;  %v816_v28 = vpop.f32.mrb[16].mxu1 }
 0xc16   :  { %v822_v29 = vadd.f32 %v816_v28, %v126_v24  ;;  %v748_v33 = vpop.f32.mrb[14].mxu0  ;;  %v1793_v35 = vpop.f32.mrb[17].mxu1 }
 0xc17   :  { %2003 = vtanh.f32 %v746_v26  ;;  %v1786_v36 = vpop.f32.mrb[15].mxu0  ;;  %v819_v37 = vpop.f32.mrb[18].mxu1  ;;  %v1599_v41 = vmul.f32 -1.442695, %v746_v26 }
 0xc18   :  { %2005 = vtanh.f32 %v822_v29  ;;  %v1794_v38 = vpop.f32.mrb[19].mxu1  ;;  %v1601_v42 = vmul.f32 -1.442695, %v822_v29 }
 0xc19   :  { %2007 = vpow2.f32 %v1599_v41 }
 0xc1a   :  { %2009 = vpow2.f32 %v1601_v42 }
 0xc21   :  { %v2004_v39 = vpop.eup %2003 }
 0xc22   :  { %v2006_v40 = vpop.eup %2005  ;;  %760 = vrot.lane.b32.xlu0 %v2004_v39, %s2156_s28 }
 0xc23   :  { %832 = vrot.lane.b32.xlu1 %v2006_v40, %s2156_s28  ;;  %v2008_v43 = vpop.eup %2007 }
 0xc24   :  { %v2010_v44 = vpop.eup %2009  ;;  %v754_v45 = vadd.f32 1.0, %v2008_v43 }
 0xc25   :  { %v826_v47 = vadd.f32 1.0, %v2010_v44 }
 0xc26   :  { %2011 = vrcp.f32 %v754_v45 }
 0xc27   :  { %2013 = vrcp.f32 %v826_v47 }
 0xc30   :  { %v2012_v48 = vpop.eup %2011 }
 0xc31   :  { %v2014_v50 = vpop.eup %2013  ;;  %v758_v54 = vmul.f32 %v2012_v48, %v2411_v63 }
 0xc32   :  { %v830_v56 = vmul.f32 %v2014_v50, %v2413_v5 }
 0xc94   :  { %v761_v49 = vpop.permute.xlu0 %760 }
 0xc95   :  { %v763_v51 = vmul.f32 %v2012_v48, %v761_v49  ;;  %v833_v52 = vpop.permute.xlu1 %832 }
 0xc96   :  { %v835_v53 = vmul.f32 %v2014_v50, %v833_v52 }
 0xc97   :  { %765 = vrot.lane.b32.xlu0 %v763_v51, %s2162_s21 }
 0xc98   :  { %837 = vrot.lane.b32.xlu1 %v835_v53, %s2162_s21 }
 0xd09   :  { %v766_v55 = vpop.permute.xlu0 %765 }
 0xd0a   :  { %v2451_v57 = vadd.f32 %v766_v55, %v758_v54  ;;  %v838_v58 = vpop.permute.xlu1 %837  ;;  %v2168_v54 = vmov 6  }
 0xd0b   :  { %v2453_v59 = vadd.f32 %v838_v58, %v830_v56 }
 0xd0c   :  { %2015 = vtanh.f32 %v2451_v57 }
 0xd0d   :  { %2017 = vtanh.f32 %v2453_v59 }
 0xd16   :  { %v2016_v60 = vpop.eup %2015 }
 0xd17   :  { %v2018_v61 = vpop.eup %2017  ;;  %771 = vrot.lane.b32.xlu0 %v2016_v60, %s2156_s28 }
 0xd18   :  { %843 = vrot.lane.b32.xlu1 %v2018_v61, %s2156_s28 }
 0xd89   :  { %v772_v63 = vpop.permute.xlu0 %771 }
 0xd8a   :  { %v774_v1 = vmul.f32 %v2012_v48, %v772_v63  ;;  %v844_v5 = vpop.permute.xlu1 %843 }
 0xd8b   :  { %v846_v7 = vmul.f32 %v2014_v50, %v844_v5  ;;  %v2075_v5 = vld [vmem:[#allocation2] sm:$0xff]  }
 0xd8c   :  { %852 = vrot.lane.b32.xlu1 %v774_v1, %s2156_s28 }
 0xd8d   :  { %848 = vrot.lane.b32.xlu0 %v846_v7, %s2162_s21  ;;  %v924_v8 = vpack.c.bf16 %v846_v7, %v846_v7 }
 0xd90   :  { %128 = vperm.xlu1 %1920, %v2244_v4  }
 0xd91   :  { %926 = vrot.lane.b32.xlu0 %v924_v8, %s2162_s21 }
 0xd94   :  { %1921 = vset.pattern.permute.xlu1 %v2168_v54 }
 0xdfe   :  { %v853_v11 = vpop.permute.xlu1 %852 }
 0xdff   :  { %v849_v10 = vpop.permute.xlu0 %848 }
 0xe00   :  { %v855_v12 = vsel %vm157_vm1, %v849_v10, %v853_v11 }
 0xe01   :  { %v856_v14 = vpack.c.bf16 %v855_v12, %v855_v12 }
 0xe03   :  { %v927_v15 = vpop.permute.xlu0 %926  ;;  %1804 = vmatmul.mubr.msk.bf16.vlgmr.msra.gmra.mrb[20].mxu1 %vm260_vm2, %v856_v14 }
 0xe04   :  { %1812 = vmatmul.mubr.msk.bf16.vlgmr.msra.gmra.mrb[16].mxu0 %vm157_vm1, %v927_v15  ;;  %1828 = vmatpush3.bf16.msra.mxu1 %v2236_v2 }
 0xe05   :  { %1816 = vmatpush3.bf16.msra.mxu0 %v2279_v30  ;;  %1829 = vmatprep.subr.bf16.mxu1 %v2159_v0 }
 0xe06   :  { %1817 = vmatprep.subr.bf16.mxu0 %v2159_v0  ;;  %1823 = vmatprep.mubr.msk.bf16.mxu0 %vm2160_vm0, %v2159_v0 }
 0xe07   :  { %1831 = vmatprep.mubr.msk.bf16.mxu1 %vm2160_vm0, %v2159_v0 }
 0xe08   :  { %1830 = vmatpush3.bf16.msra.mxu1 %v2239_v3 }
 0xe09   :  { %1818 = vmatpush3.bf16.msra.mxu0 %v2282_v31  ;;  %1835 = vmatprep.subr.bf16.mxu1 %v2159_v0 }
 0xe0a   :  { %1819 = vmatprep.subr.bf16.mxu0 %v2159_v0 }
 0xe0d   :  { %1820 = vmatpush3.bf16.msra.mxu0 %v2286_v32 }
 0xe0e   :  { %1821 = vmatprep.subr.bf16.mxu0 %v2159_v0 }
 0xe0f   :  { %v129_v2 = vpop.permute.xlu1 %128 }
 0xe10   :  { %v131_v16 = vmul.f32 %v129_v2, %v2266_v9 }
 0xe11   :  { %1822 = vmatpush3.bf16.msra.mxu0 %v2292_v34 }
 0xe12   :  { %1847 = vmatprep.subr.bf16.mxu0 %v2159_v0  ;;  %v132_v18 = vadd.f32 %v131_v16, %v2271_v13 }
 0xed6   :  { %v894_v3 = vpop.f32.mrb[20].mxu1 }
 0xed7   :  { %v895_v17 = vadd.f32 %v894_v3, %v2322_v46  ;;  %v1805_v19 = vpop.f32.mrb[21].mxu1  ;;  %v965_v20 = vpop.f32.mrb[16].mxu0 }
 0xed8   :  { %v971_v21 = vadd.f32 %v965_v20, %v132_v18  ;;  %v897_v22 = vpop.f32.mrb[22].mxu1  ;;  %v1813_v23 = vpop.f32.mrb[17].mxu0 }
 0xed9   :  { %2019 = vtanh.f32 %v895_v17  ;;  %v1806_v24 = vpop.f32.mrb[23].mxu1  ;;  %v968_v25 = vpop.f32.mrb[18].mxu0  ;;  %v1603_v29 = vmul.f32 -1.442695, %v895_v17 }
 0xeda   :  { %2021 = vtanh.f32 %v971_v21  ;;  %v1814_v26 = vpop.f32.mrb[19].mxu0  ;;  %v1605_v33 = vmul.f32 -1.442695, %v971_v21 }
 0xedb   :  { %2023 = vpow2.f32 %v1603_v29 }
 0xedc   :  { %2025 = vpow2.f32 %v1605_v33 }
 0xee3   :  { %v2020_v27 = vpop.eup %2019 }
 0xee4   :  { %v2022_v28 = vpop.eup %2021  ;;  %909 = vrot.lane.b32.xlu0 %v2020_v27, %s2156_s28 }
 0xee5   :  { %981 = vrot.lane.b32.xlu1 %v2022_v28, %s2156_s28  ;;  %v2024_v35 = vpop.eup %2023 }
 0xee6   :  { %v2026_v36 = vpop.eup %2025  ;;  %v903_v37 = vadd.f32 1.0, %v2024_v35 }
 0xee7   :  { %v975_v38 = vadd.f32 1.0, %v2026_v36 }
 0xee8   :  { %2027 = vrcp.f32 %v903_v37 }
 0xee9   :  { %2029 = vrcp.f32 %v975_v38 }
 0xef2   :  { %v2028_v39 = vpop.eup %2027 }
 0xef3   :  { %v2030_v41 = vpop.eup %2029  ;;  %v907_v45 = vmul.f32 %v2028_v39, %v2451_v57 }
 0xef4   :  { %v979_v48 = vmul.f32 %v2030_v41, %v2453_v59 }
 0xf56   :  { %v910_v40 = vpop.permute.xlu0 %909 }
 0xf57   :  { %v912_v42 = vmul.f32 %v2028_v39, %v910_v40  ;;  %v982_v43 = vpop.permute.xlu1 %981 }
 0xf58   :  { %v984_v44 = vmul.f32 %v2030_v41, %v982_v43 }
 0xf59   :  { %914 = vrot.lane.b32.xlu0 %v912_v42, %s2162_s21  ;;  %v2169_v42 = vmov 7  }
 0xf5a   :  { %986 = vrot.lane.b32.xlu1 %v984_v44, %s2162_s21 }
 0xfcb   :  { %v915_v47 = vpop.permute.xlu0 %914 }
 0xfcc   :  { %v2491_v49 = vadd.f32 %v915_v47, %v907_v45  ;;  %v987_v50 = vpop.permute.xlu1 %986 }
 0xfcd   :  { %v2493_v51 = vadd.f32 %v987_v50, %v979_v48 }
 0xfce   :  { %2031 = vtanh.f32 %v2491_v49 }
 0xfcf   :  { %2033 = vtanh.f32 %v2493_v51 }
 0xfd8   :  { %v2032_v52 = vpop.eup %2031 }
 0xfd9   :  { %v2034_v53 = vpop.eup %2033  ;;  %920 = vrot.lane.b32.xlu0 %v2032_v52, %s2156_s28 }
 0xfda   :  { %992 = vrot.lane.b32.xlu1 %v2034_v53, %s2156_s28 }
0x104b   :  { %v921_v55 = vpop.permute.xlu0 %920 }
0x104c   :  { %v923_v56 = vmul.f32 %v2028_v39, %v921_v55  ;;  %v993_v57 = vpop.permute.xlu1 %992  ;;  %v2078_v55 = vld [vmem:[#allocation2 + $0x10] sm:$0xff]  }
0x104d   :  { %v995_v58 = vmul.f32 %v2030_v41, %v993_v57  ;;  %v2080_v57 = vld [vmem:[#allocation2 + $0x20] sm:$0xff]  }
0x104e   :  { %1001 = vrot.lane.b32.xlu1 %v923_v56, %s2156_s28  ;;  %v2079_v56 = vld [vmem:[#allocation2 + $0x18] sm:$0xff]  }
0x104f   :  { %997 = vrot.lane.b32.xlu0 %v995_v58, %s2162_s21  ;;  %v1073_v59 = vpack.c.bf16 %v995_v58, %v995_v58  ;;  %v2081_v58 = vld [vmem:[#allocation2 + $0x28] sm:$0xff]  }
0x1052   :  { %134 = vperm.xlu1 %1921, %v2244_v4   ;;  %v2076_v4 = vld [vmem:[#allocation2 + $0x8] sm:$0xff]  }
0x1053   :  { %1075 = vrot.lane.b32.xlu0 %v1073_v59, %s2162_s21 }
0x1056   :  { %1922 = vset.pattern.permute.xlu1 %v2169_v42 }
0x10c0   :  { %v1002_v60 = vpop.permute.xlu1 %1001 }
0x10c1   :  { %v998_v61 = vpop.permute.xlu0 %997 }
0x10c2   :  { %v1004_v62 = vsel %vm157_vm1, %v998_v61, %v1002_v60 }
0x10c3   :  { %v1005_v63 = vpack.c.bf16 %v1004_v62, %v1004_v62 }
0x10c5   :  { %v1076_v1 = vpop.permute.xlu0 %1075  ;;  %1824 = vmatmul.mubr.msk.bf16.vlgmr.msra.gmra.mrb[20].mxu0 %vm260_vm2, %v1005_v63 }
0x10c6   :  { %1832 = vmatmul.mubr.msk.bf16.vlgmr.msra.gmra.mrb[24].mxu1 %vm157_vm1, %v1076_v1  ;;  %1848 = vmatpush3.bf16.msra.mxu0 %v2075_v5 }
0x10c7   :  { %1836 = vmatpush3.bf16.msra.mxu1 %v2279_v30  ;;  %1849 = vmatprep.subr.bf16.mxu0 %v2159_v0 }
0x10c8   :  { %1837 = vmatprep.subr.bf16.mxu1 %v2159_v0  ;;  %1843 = vmatprep.mubr.msk.bf16.mxu1 %vm2160_vm0, %v2159_v0 }
0x10c9   :  { %1851 = vmatprep.mubr.msk.bf16.mxu0 %vm2160_vm0, %v2159_v0 }
0x10ca   :  { %1850 = vmatpush3.bf16.msra.mxu0 %v2076_v4 }
0x10cb   :  { %1838 = vmatpush3.bf16.msra.mxu1 %v2282_v31  ;;  %1855 = vmatprep.subr.bf16.mxu0 %v2159_v0 }
0x10cc   :  { %1839 = vmatprep.subr.bf16.mxu1 %v2159_v0 }
0x10cf   :  { %1840 = vmatpush3.bf16.msra.mxu1 %v2286_v32 }
0x10d0   :  { %1841 = vmatprep.subr.bf16.mxu1 %v2159_v0 }
0x10d1   :  { %v135_v30 = vpop.permute.xlu1 %134 }
0x10d2   :  { %v137_v7 = vmul.f32 %v135_v30, %v2266_v9 }
0x10d3   :  { %1842 = vmatpush3.bf16.msra.mxu1 %v2292_v34 }
0x10d4   :  { %1867 = vmatprep.subr.bf16.mxu1 %v2159_v0  ;;  %v138_v8 = vadd.f32 %v137_v7, %v2271_v13 }
0x1198   :  { %v1043_v11 = vpop.f32.mrb[20].mxu0 }
0x1199   :  { %v1044_v31 = vadd.f32 %v1043_v11, %v2322_v46  ;;  %v1825_v10 = vpop.f32.mrb[21].mxu0  ;;  %v1114_v12 = vpop.f32.mrb[24].mxu1 }
0x119a   :  { %v1120_v14 = vadd.f32 %v1114_v12, %v138_v8  ;;  %v1046_v15 = vpop.f32.mrb[22].mxu0  ;;  %v1833_v2 = vpop.f32.mrb[25].mxu1 }
0x119b   :  { %2035 = vtanh.f32 %v1044_v31  ;;  %v1826_v32 = vpop.f32.mrb[23].mxu0  ;;  %v1117_v16 = vpop.f32.mrb[26].mxu1  ;;  %v1607_v17 = vmul.f32 -1.442695, %v1044_v31 }
0x119c   :  { %2037 = vtanh.f32 %v1120_v14  ;;  %v1834_v34 = vpop.f32.mrb[27].mxu1  ;;  %v1609_v19 = vmul.f32 -1.442695, %v1120_v14 }
0x119d   :  { %2039 = vpow2.f32 %v1607_v17 }
0x119e   :  { %2041 = vpow2.f32 %v1609_v19 }
0x11a5   :  { %v2036_v18 = vpop.eup %2035 }
0x11a6   :  { %v2038_v3 = vpop.eup %2037  ;;  %1058 = vrot.lane.b32.xlu0 %v2036_v18, %s2156_s28 }
0x11a7   :  { %1130 = vrot.lane.b32.xlu1 %v2038_v3, %s2156_s28  ;;  %v2040_v20 = vpop.eup %2039 }
0x11a8   :  { %v2042_v21 = vpop.eup %2041  ;;  %v1052_v22 = vadd.f32 1.0, %v2040_v20 }
0x11a9   :  { %v1124_v23 = vadd.f32 1.0, %v2042_v21 }
0x11aa   :  { %2043 = vrcp.f32 %v1052_v22 }
0x11ab   :  { %2045 = vrcp.f32 %v1124_v23 }
0x11b4   :  { %v2044_v24 = vpop.eup %2043 }
0x11b5   :  { %v2046_v26 = vpop.eup %2045  ;;  %v1056_v33 = vmul.f32 %v2044_v24, %v2491_v49  ;;  %v2077_v49 = vld [vmem:[%s2610_s0] sm:$0x3] }
0x11b6   :  { %v1128_v36 = vmul.f32 %v2046_v26, %v2493_v51 }
0x1218   :  { %v1059_v25 = vpop.permute.xlu0 %1058 }
0x1219   :  { %v1061_v27 = vmul.f32 %v2044_v24, %v1059_v25  ;;  %v1131_v28 = vpop.permute.xlu1 %1130 }
0x121a   :  { %v1133_v29 = vmul.f32 %v2046_v26, %v1131_v28 }
0x121b   :  { %1063 = vrot.lane.b32.xlu0 %v1061_v27, %s2162_s21 }
0x121c   :  { %1135 = vrot.lane.b32.xlu1 %v1133_v29, %s2162_s21 }
0x128d   :  { %v1064_v35 = vpop.permute.xlu0 %1063 }
0x128e   :  { %v2529_v37 = vadd.f32 %v1064_v35, %v1056_v33  ;;  %v1136_v38 = vpop.permute.xlu1 %1135 }
0x128f   :  { %v2531_v39 = vadd.f32 %v1136_v38, %v1128_v36 }
0x1290   :  { %2047 = vtanh.f32 %v2529_v37 }
0x1291   :  { %2049 = vtanh.f32 %v2531_v39 }
0x129a   :  { %v2048_v40 = vpop.eup %2047 }
0x129b   :  { %v2050_v41 = vpop.eup %2049  ;;  %1069 = vrot.lane.b32.xlu0 %v2048_v40, %s2156_s28 }
0x129c   :  { %1141 = vrot.lane.b32.xlu1 %v2050_v41, %s2156_s28 }
0x130d   :  { %v1070_v43 = vpop.permute.xlu0 %1069 }
0x130e   :  { %v1072_v44 = vmul.f32 %v2044_v24, %v1070_v43  ;;  %v1142_v45 = vpop.permute.xlu1 %1141 }
0x130f   :  { %v1144_v47 = vmul.f32 %v2046_v26, %v1142_v45 }
0x1310   :  { %1150 = vrot.lane.b32.xlu1 %v1072_v44, %s2156_s28 }
0x1311   :  { %1146 = vrot.lane.b32.xlu0 %v1144_v47, %s2162_s21  ;;  %v1222_v48 = vpack.c.bf16 %v1144_v47, %v1144_v47  ;;  %v1371_v47 = vld [vmem:[%s2611_s1] sm:$0x3] }
0x1314   :  { %140 = vperm.xlu1 %1922, %v2077_v49  }
0x1315   :  { %1224 = vrot.lane.b32.xlu0 %v1222_v48, %s2162_s21 }
0x1382   :  { %v1151_v50 = vpop.permute.xlu1 %1150 }
0x1383   :  { %v1147_v51 = vpop.permute.xlu0 %1146 }
0x1384   :  { %v1153_v52 = vsel %vm157_vm1, %v1147_v51, %v1151_v50 }
0x1385   :  { %v1154_v53 = vpack.c.bf16 %v1153_v52, %v1153_v52 }
0x1387   :  { %v1225_v54 = vpop.permute.xlu0 %1224  ;;  %1844 = vmatmul.mubr.msk.bf16.vlgmr.msra.gmra.mrb[28].mxu1 %vm260_vm2, %v1154_v53 }
0x1388   :  { %1852 = vmatmul.mubr.msk.bf16.vlgmr.msra.gmra.mrb[24].mxu0 %vm157_vm1, %v1225_v54  ;;  %1875 = vmatprep.mubr.msk.bf16.mxu1 %vm2160_vm0, %v2159_v0 }
0x1389   :  { %1856 = vmatpush3.bf16.msra.mxu0 %v2078_v55  ;;  %1863 = vmatprep.mubr.msk.bf16.mxu0 %vm2160_vm0, %v2159_v0 }
0x138a   :  { %1857 = vmatprep.subr.bf16.mxu0 %v2159_v0 }
0x138d   :  { %1858 = vmatpush3.bf16.msra.mxu0 %v2079_v56  ;;  %v1935_v56 = vld [vmem:[#allocation2 + $0x30] sm:$0xff]  }
0x138e   :  { %1859 = vmatprep.subr.bf16.mxu0 %v2159_v0  ;;  %1868 = vmatpush3.bf16.msra.mxu1 %v1935_v56 }
0x138f   :  { %1869 = vmatprep.subr.bf16.mxu1 %v2159_v0 }
0x1391   :  { %1860 = vmatpush3.bf16.msra.mxu0 %v2080_v57  ;;  %v1936_v57 = vld [vmem:[#allocation2 + $0x38] sm:$0xff]  }
0x1392   :  { %1861 = vmatprep.subr.bf16.mxu0 %v2159_v0  ;;  %1870 = vmatpush3.bf16.msra.mxu1 %v1936_v57 }
0x1393   :  { %v141_v59 = vpop.permute.xlu1 %140  ;;  %1871 = vmatprep.subr.bf16.mxu1 %v2159_v0 }
0x1394   :  { %v143_v60 = vmul.f32 %v141_v59, %v2266_v9 }
0x1395   :  { %1862 = vmatpush3.bf16.msra.mxu0 %v2081_v58  ;;  %v1937_v58 = vld [vmem:[#allocation2 + $0x40] sm:$0xff]  }
0x1396   :  { %1879 = vmatprep.subr.bf16.mxu0 %v2159_v0  ;;  %v144_v61 = vadd.f32 %v143_v60, %v2271_v13  ;;  %1872 = vmatpush3.bf16.msra.mxu1 %v1937_v58  ;;  %v1379_v60 = vsub.s32 3, %v2257_v6 }
0x1397   :  { %1873 = vmatprep.subr.bf16.mxu1 %v2159_v0 }
0x145a   :  { %v1192_v62 = vpop.f32.mrb[28].mxu1 }
0x145b   :  { %v1193_v63 = vadd.f32 %v1192_v62, %v2322_v46  ;;  %v1845_v1 = vpop.f32.mrb[29].mxu1  ;;  %v1263_v5 = vpop.f32.mrb[24].mxu0 }
0x145c   :  { %v1269_v4 = vadd.f32 %v1263_v5, %v144_v61  ;;  %v1195_v30 = vpop.f32.mrb[30].mxu1  ;;  %v1853_v7 = vpop.f32.mrb[25].mxu0  ;;  %v2082_v61 = vld [vmem:[%s2614_s4] sm:$0xff]  ;;  %v1938_v5 = vld [vmem:[#allocation2 + $0x48] sm:$0xff]   ;;  %s2170_s4 = smov [#allocation7]  }
0x145d   :  { %2051 = vtanh.f32 %v1193_v63  ;;  %v1846_v8 = vpop.f32.mrb[31].mxu1  ;;  %v1266_v11 = vpop.f32.mrb[26].mxu0  ;;  %v1611_v9 = vmul.f32 -1.442695, %v1193_v63  ;;  %v1380_v62 = vrot.slane %v2082_v61, %v1379_v60  ;;  %v1384_v63 = vsub.s32 4, %v2257_v6  ;;  %1874 = vmatpush3.bf16.msra.mxu1 %v1938_v5  ;;  %v1939_v7 = vld [vmem:[#allocation5] sm:$0xff]  }
0x145e   :  { %2053 = vtanh.f32 %v1269_v4  ;;  %v1854_v31 = vpop.f32.mrb[27].mxu0  ;;  %v1613_v13 = vmul.f32 -1.442695, %v1269_v4  ;;  %v1940_v11 = vld [vmem:[#allocation5 + $0x8] sm:$0xff]   ;;  %s1569_s26 = sshll.u32 %s2170_s4, 4  ;;  %s1570_s26 = int_to_ptr.vmem [resolvable:$true] %s1569_s26 }
0x145f   :  { %2055 = vpow2.f32 %v1611_v9  ;;  %v1385_v4 = vrot.slane %v2082_v61, %v1384_v63  ;;  %v1941_v9 = vld [vmem:[#allocation5 + $0x10] sm:$0xff]   ;;  %s2127_s27 = scalar_lea.vmem %s1570_s26, 32  ;;  %p2132_p3 = scmp.lt.s32.totalorder %s1570_s26, %s1570_s26 }
0x1460   :  { %2057 = vpow2.f32 %v1613_v13  ;;  %v1942_v13 = vld [vmem:[#allocation5 + $0x18] sm:$0xff]   ;;  %p2128_p2 = scmp.ne.s32.totalorder %s1570_s26, %s2127_s27  ;;  %p2133_p4 = scmp.lt.s32.totalorder %s2127_s27, %s2127_s27 }
0x1462   :  { %p2134_p5 = por %p2133_p4, %p2132_p3 }
0x1464   :  { %p2135_p6 = pnand %p2134_p5, %p2128_p2 }
0x1467   :  { %v2052_v10 = vpop.eup %2051 }
0x1468   :  { %v2054_v12 = vpop.eup %2053  ;;  %1207 = vrot.lane.b32.xlu0 %v2052_v10, %s2156_s28 }
0x1469   :  { %1279 = vrot.lane.b32.xlu1 %v2054_v12, %s2156_s28  ;;  %v2056_v14 = vpop.eup %2055 }
0x146a   :  { %v2058_v15 = vpop.eup %2057  ;;  %v1201_v2 = vadd.f32 1.0, %v2056_v14  ;;  %v1943_v14 = vld [vmem:[#allocation5 + $0x20] sm:$0xff]  }
0x146b   :  { %v1273_v32 = vadd.f32 1.0, %v2058_v15  ;;  %v1944_v15 = vld [vmem:[#allocation5 + $0x28] sm:$0xff]  }
0x146c   :  { %2059 = vrcp.f32 %v1201_v2 }
0x146d   :  { %2061 = vrcp.f32 %v1273_v32 }
0x1476   :  { %v2060_v16 = vpop.eup %2059 }
0x1477   :  { %v2062_v18 = vpop.eup %2061  ;;  %v1205_v20 = vmul.f32 %v2060_v16, %v2529_v37 }
0x1478   :  { %v1277_v22 = vmul.f32 %v2062_v18, %v2531_v39 }
0x14da   :  { %v1208_v34 = vpop.permute.xlu0 %1207 }
0x14db   :  { %v1210_v3 = vmul.f32 %v2060_v16, %v1208_v34  ;;  %v1280_v17 = vpop.permute.xlu1 %1279 }
0x14dc   :  { %v1282_v19 = vmul.f32 %v2062_v18, %v1280_v17  ;;  %v1946_v17 = vld [vmem:[#allocation5 + $0x38] sm:$0xff]  }
0x14dd   :  { %1212 = vrot.lane.b32.xlu0 %v1210_v3, %s2162_s21  ;;  %v1945_v3 = vld [vmem:[#allocation5 + $0x30] sm:$0xff]  }
0x14de   :  { %1284 = vrot.lane.b32.xlu1 %v1282_v19, %s2162_s21  ;;  %v1399_v19 = vsub.s32 5, %v2257_v6 }
0x154f   :  { %v1213_v21 = vpop.permute.xlu0 %1212 }
0x1550   :  { %v1215_v23 = vadd.f32 %v1213_v21, %v1205_v20  ;;  %v1285_v24 = vpop.permute.xlu1 %1284  ;;  %v1400_v20 = vrot.slane %v2082_v61, %v1399_v19 }
0x1551   :  { %v1287_v25 = vadd.f32 %v1285_v24, %v1277_v22 }
0x1552   :  { %2063 = vtanh.f32 %v1215_v23 }
0x1553   :  { %2065 = vtanh.f32 %v1287_v25 }
0x155c   :  { %v2064_v26 = vpop.eup %2063 }
0x155d   :  { %v2066_v27 = vpop.eup %2065  ;;  %1218 = vrot.lane.b32.xlu0 %v2064_v26, %s2156_s28 }
0x155e   :  { %1290 = vrot.lane.b32.xlu1 %v2066_v27, %s2156_s28 }
0x15cf   :  { %v1219_v28 = vpop.permute.xlu0 %1218 }
0x15d0   :  { %v1221_v29 = vmul.f32 %v2060_v16, %v1219_v28  ;;  %v1291_v33 = vpop.permute.xlu1 %1290  ;;  %v1472_v28 = vsub.s32 6, %v2257_v6 }
0x15d1   :  { %v1293_v35 = vmul.f32 %v2062_v18, %v1291_v33 }
0x15d2   :  { %1299 = vrot.lane.b32.xlu1 %v1221_v29, %s2156_s28  ;;  %v1473_v29 = vrot.slane %v2082_v61, %v1472_v28 }
0x15d3   :  { %1295 = vrot.lane.b32.xlu0 %v1293_v35, %s2162_s21 }
0x1644   :  { %v1300_v36 = vpop.permute.xlu1 %1299 }
0x1645   :  { %v1296_v37 = vpop.permute.xlu0 %1295 }
0x1646   :  { %v1302_v38 = vsel %vm157_vm1, %v1296_v37, %v1300_v36 }
0x1647   :  { %v1303_v39 = vpack.c.bf16 %v1302_v38, %v1302_v38 }
0x1649   :  { %1864 = vmatmul.mubr.msk.bf16.vlgmr.msra.gmra.mrb[28].mxu0 %vm260_vm2, %v1303_v39 }
0x164a   :  { %1895 = vmatprep.mubr.msk.bf16.mxu0 %vm2160_vm0, %v2159_v0  ;;  %1880 = vmatpush3.bf16.msra.mxu0 %v1939_v7 }
0x164b   :  { %1881 = vmatprep.subr.bf16.mxu0 %v2159_v0 }
0x164e   :  { %1882 = vmatpush3.bf16.msra.mxu0 %v1940_v11 }
0x164f   :  { %1883 = vmatprep.subr.bf16.mxu0 %v2159_v0 }
0x1652   :  { %1884 = vmatpush3.bf16.msra.mxu0 %v1941_v9 }
0x1653   :  { %1885 = vmatprep.subr.bf16.mxu0 %v2159_v0 }
0x1656   :  { %1886 = vmatpush3.bf16.msra.mxu0 %v1942_v13 }
0x1657   :  { %1887 = vmatprep.subr.bf16.mxu0 %v2159_v0 }
0x165a   :  { %1888 = vmatpush3.bf16.msra.mxu0 %v1943_v14 }
0x165b   :  { %1889 = vmatprep.subr.bf16.mxu0 %v2159_v0 }
0x165e   :  { %1890 = vmatpush3.bf16.msra.mxu0 %v1944_v15 }
0x165f   :  { %1891 = vmatprep.subr.bf16.mxu0 %v2159_v0 }
0x1662   :  { %1892 = vmatpush3.bf16.msra.mxu0 %v1945_v3 }
0x1663   :  { %1893 = vmatprep.subr.bf16.mxu0 %v2159_v0 }
0x1666   :  { %1894 = vmatpush3.bf16.msra.mxu0 %v1946_v17 }
0x171c   :  { %v1341_v40 = vpop.f32.mrb[28].mxu0 }
0x171d   :  { %v1342_v41 = vadd.f32 %v1341_v40, %v2322_v46  ;;  %v1865_v42 = vpop.f32.mrb[29].mxu0 }
0x171e   :  { %v1344_v43 = vpop.f32.mrb[30].mxu0 }
0x171f   :  { %2067 = vtanh.f32 %v1342_v41  ;;  %v1866_v44 = vpop.f32.mrb[31].mxu0  ;;  %v1615_v48 = vmul.f32 -1.442695, %v1342_v41 }
0x1721   :  { %2069 = vpow2.f32 %v1615_v48 }
0x1729   :  { %v2068_v45 = vpop.eup %2067 }
0x172a   :  { %1356 = vrot.lane.b32.xlu0 %v2068_v45, %s2156_s28 }
0x172b   :  { %v2070_v49 = vpop.eup %2069 }
0x172c   :  { %v1350_v50 = vadd.f32 1.0, %v2070_v49 }
0x172e   :  { %1374 = vperm.xlu0 %1923, %v1371_v47   ;;  %2071 = vrcp.f32 %v1350_v50 }
0x1738   :  { %v2072_v51 = vpop.eup %2071 }
0x1739   :  { %v1354_v53 = vmul.f32 %v2072_v51, %v1215_v23 }
0x179c   :  { %v1357_v52 = vpop.permute.xlu0 %1356 }
0x179d   :  { %v1359_v46 = vmul.f32 %v2072_v51, %v1357_v52 }
0x179f   :  { %1361 = vrot.lane.b32.xlu1 %v1359_v46, %s2162_s21 }
0x17ad   :  { %v1375_v1 = vpop.permute.xlu0 %1374 }
0x17ae   :  { %v1381_v30 = vmul.f32 %v1380_v62, %v1375_v1 }
0x17b0   :  { %v1386_v8 = vadd.f32 %v1385_v4, %v1381_v30 }
0x1811   :  { %v1362_v54 = vpop.permute.xlu1 %1361 }
0x1812   :  { %v1364_v55 = vadd.f32 %v1362_v54, %v1354_v53 }
0x1814   :  { %2073 = vtanh.f32 %v1364_v55 }
0x181e   :  { %v2074_v59 = vpop.eup %2073 }
0x181f   :  { %1367 = vrot.lane.b32.xlu1 %v2074_v59, %s2156_s28 }
0x1891   :  { %v1368_v31 = vpop.permute.xlu1 %1367 }
0x1892   :  { %v1370_v10 = vmul.f32 %v2072_v51, %v1368_v31 }
0x1894   :  { %v1924_v12 = vpack.i.bf16 %v1386_v8, %v1370_v10 }
0x1896   :  { %1925 = vrot.lane.b32.xlu1 %v1924_v12, %s2162_s21 }
0x1908   :  { %v1926_v2 = vpop.permute.xlu1 %1925 }
0x1909   :  { %v1928_v32 = vunpack.i.h.bf16 %v1926_v2  ;;  %v1927_v16 = vunpack.i.l.bf16 %v1926_v2 }
0x190b   :  { %v1395_v34 = vsel %vm157_vm1, %v1927_v16, %v1928_v32 }
0x190c   :  { %v1396_v18 = vpack.c.bf16 %v1395_v34, %v1395_v34 }
0x190e   :  { %1876 = vmatmul.mubr.msk.bf16.vlgmr.msra.gmra.mrb[32].mxu1 %vm260_vm2, %v1396_v18 }
0x19e1   :  { %v1462_v21 = vpop.f32.mrb[32].mxu1 }
0x19e2   :  { %v1463_v22 = vadd.f32 %v1462_v21, %v1400_v20  ;;  %v1877_v23 = vpop.f32.mrb[33].mxu1 }
0x19e3   :  { %v1465_v24 = vpop.f32.mrb[34].mxu1 }
0x19e4   :  { %v1468_v25 = vmax.f32 %v1463_v22, 0.0  ;;  %v1878_v26 = vpop.f32.mrb[35].mxu1 }
0x19e6   :  { %v1469_v27 = vpack.c.bf16 %v1468_v25, %v1468_v25 }
0x19e8   :  { %1896 = vmatmul.mubr.bf16.vlgmr.msra.gmra.mrb[32].mxu0 %v1469_v27 }
0x1abb   :  { %v1556_v33 = vpop.f32.mrb[32].mxu0 }
0x1abc   :  { %v1557_v0 = vadd.f32 %v1556_v33, %v1473_v29  ;;  %v1897_v35 = vpop.f32.mrb[33].mxu0 }
0x1abd   :  { %v1559_v36 = vpop.f32.mrb[34].mxu0 }
0x1abe   :  { %1562 = vst [vmem:[#allocation7] sm:$0x3] %v1557_v0  ;;  %v1898_v37 = vpop.f32.mrb[35].mxu0 }
0x1abf   :  { %2138 = shalt.err (!%p2135_p6)
}
0x1ac0   :  { %s2139_s30 = scalar_lea.hbm %s2615_s5, 32 }
0x1ac1   :  { %p2140_p7 = scmp.ne.s32.totalorder %s2615_s5, %s2139_s30  ;;  %p2143_p8 = scmp.lt.u32.totalorder %s2139_s30, %s2615_s5 }
0x1ac3   :  { %p2145_p9 = pnand %p2143_p8, %p2140_p7 }
0x1ac5   :  { %2148 = shalt.err (!%p2145_p9)
}
0x1ac6   :  { %1572 = dma.vmem_to_hbm [thread:$0]  %s1570_s26, 32, %s2615_s5, [#allocation4]  }
0x1ac7   :  { %2153 = dma.done.wait [#allocation4], 32  }
0x1ac8   :  { %2154 = vsyncadd [#allocation4], 4294967264 }
0x1ac9   :  { %1576 = vsyncpa [#allocation3], 1 }
0x1aca   :  { %1577 = vsyncpa [#allocation6], 1 }
0x1acb   :  { %1578 = vsyncpa [#allocation4], 1 }

</bundles_post_ra>
